<compile_context>
chip_gen: v7x
topology: tpu7x:2x2x1
jax: 0.10.0
libtpu: 0.0.40
codegen_flags: <defaults>
</compile_context>

<pallas_src>
import functools

import jax
import jax.numpy as jnp
from jax.experimental import pallas as pl
from jax.experimental.pallas import tpu as pltpu

FEAT_DIM = 8192          # oscc middle-feature width == kernel K after folding the concat
HIDDEN = 512
NUM_CLASSES = 16
TK = 4096                # K-reduction tile for fc1 (2 steps over 8192)
TN = 256                 # hidden (N) tile -> 2 blocks; parallel axis (megacore on v7x)


def _mlp_head_kernel(feat_ref, w1_ref, b1_ref, w2_ref, out_ref, h_acc):
    """Grid = (hidden-half [parallel], K-slab [arbitrary]).

    For each hidden half: accumulate fc1 partial products into a VMEM f32 scratch
    (seeded with the fc1 bias), then on the last K step apply ReLU and the fc2
    slice for that half, writing a partial-logit block. Halves are summed outside.
    """
    k = pl.program_id(1)

    @pl.when(k == 0)
    def _():
        # Seed accumulator with the fc1 bias slice for this hidden half.
        h_acc[...] = jnp.broadcast_to(b1_ref[...], h_acc.shape)

    # fc1 partial product for this K-slab (bf16 x bf16 -> f32 accumulate on MXU).
    h_acc[...] += jnp.dot(
        feat_ref[...], w1_ref[...], preferred_element_type=jnp.float32
    )

    @pl.when(k == pl.num_programs(1) - 1)
    def _():
        hidden = jnp.maximum(h_acc[...], 0.0)                      # ReLU(fc1(feat) + b1)
        partial = jnp.dot(hidden, w2_ref[...], preferred_element_type=jnp.float32)
        out_ref[...] = partial[None].astype(out_ref.dtype)          # (1, B, 16) partial logits


@functools.partial(jax.jit, static_argnames=("tk", "tn"))
def state2keyframe_head(feat, w1_eff, b1, w2_t, *, tk=TK, tn=TN):
    """feat: (B, FEAT_DIM) bf16; w1_eff: (FEAT_DIM, HIDDEN) bf16 (concat folded);
    b1: (1, HIDDEN) f32; w2_t: (HIDDEN, NUM_CLASSES) f32.
    Returns (HIDDEN//tn, B, NUM_CLASSES) partial logits (no fc2 bias)."""
    B, K = feat.shape
    assert K == FEAT_DIM and K % tk == 0 and HIDDEN % tn == 0
    n_k = K // tk
    n_h = HIDDEN // tn

    grid_spec = pltpu.PrefetchScalarGridSpec(
        num_scalar_prefetch=0,
        grid=(n_h, n_k),
        in_specs=[
            pl.BlockSpec((B, tk), lambda h, k: (0, k)),               # feat K-slab (bf16)
            pl.BlockSpec((tk, tn), lambda h, k: (k, h)),              # fc1 weight (K, N) slab (bf16)
            pl.BlockSpec((1, tn), lambda h, k: (0, h)),               # fc1 bias slice (f32)
            pl.BlockSpec((tn, NUM_CLASSES), lambda h, k: (h, 0)),     # fc2 weight slice (f32)
        ],
        out_specs=pl.BlockSpec((1, B, NUM_CLASSES), lambda h, k: (h, 0, 0)),
        scratch_shapes=[pltpu.VMEM((B, tn), jnp.float32)],
    )

    return pl.pallas_call(
        _mlp_head_kernel,
        out_shape=jax.ShapeDtypeStruct((n_h, B, NUM_CLASSES), jnp.float32),
        grid_spec=grid_spec,
        compiler_params=pltpu.CompilerParams(
            dimension_semantics=("parallel", "arbitrary"),
            # Actual footprint ~5 MiB (double-buffered 2 MiB w1 slabs dominate);
            # 32 MiB leaves headroom and stays well under v7x's 64 MiB physical VMEM.
            vmem_limit_bytes=32 << 20,
        ),
    )(feat, w1_eff, b1, w2_t)


def state2keyframe_forward(oscc_feat, kparams):
    """oscc_feat: (B, 1, 8192) — output of the frozen oscc backbone with middle=True."""
    f = jnp.squeeze(oscc_feat, axis=1).astype(jnp.bfloat16)      # (B, 8192) bf16
    partials = state2keyframe_head(
        f, kparams["w1_eff"], kparams["b1"], kparams["w2_t"]
    )                                                            # (n_h, B, 16)
    out = partials.sum(axis=0) + kparams["b2"]                   # combine hidden halves + fc2 bias
    return out[:, None, :]                                       # unsqueeze(dim=1) -> (B, 1, 16)


def init_params(key):
    """Raw parameters in PyTorch nn.Linear layout: weight (out, in), bias (out,)."""
    k1, k2, k3, k4 = jax.random.split(key, 4)
    w1 = jax.random.normal(k1, (HIDDEN, 2 * FEAT_DIM), jnp.float32) * 0.01
    b1 = jax.random.normal(k2, (HIDDEN,), jnp.float32) * 0.01
    w2 = jax.random.normal(k3, (NUM_CLASSES, HIDDEN), jnp.float32) * 0.01
    b2 = jax.random.normal(k4, (NUM_CLASSES,), jnp.float32) * 0.01
    return {"w1": w1, "b1": b1, "w2": w2, "b2": b2}


def prepare_kernel_params(raw):
    """One-time prep of the frozen weights for the kernel:
    transpose to (in, out), fold the concat((f, f)) duplication into fc1, cast to bf16."""
    w1_t = raw["w1"].T                                            # (16384, 512)
    w1_eff = (w1_t[:FEAT_DIM] + w1_t[FEAT_DIM:]).astype(jnp.bfloat16)   # (8192, 512)
    return {
        "w1_eff": w1_eff,
        "b1": raw["b1"].reshape(1, HIDDEN),                       # f32 (tiny)
        "w2_t": raw["w2"].T,                                      # (512, 16) f32 (tiny)
        "b2": raw["b2"].reshape(1, NUM_CLASSES),                  # f32 (tiny)
    }


if __name__ == "__main__":
    key = jax.random.PRNGKey(0)
    pkey, fkey = jax.random.split(key)
    raw = init_params(pkey)
    kparams = prepare_kernel_params(raw)

    B = 2
    oscc_feat = jax.random.normal(fkey, (B, 1, FEAT_DIM), jnp.float32)

    out = state2keyframe_forward(oscc_feat, kparams)
    out = jax.block_until_ready(out)
    assert out.shape == (B, 1, NUM_CLASSES), out.shape

    # Reference 1: identical folded-bf16 math in plain JAX (validates kernel exactly).
    f = jnp.squeeze(oscc_feat, axis=1)
    h = jnp.dot(f.astype(jnp.bfloat16), kparams["w1_eff"],
                preferred_element_type=jnp.float32)
    h = jnp.maximum(h + kparams["b1"], 0.0)
    ref_bf16 = (jnp.dot(h, kparams["w2_t"], preferred_element_type=jnp.float32)
                + kparams["b2"])[:, None, :]
    assert jnp.allclose(out, ref_bf16, atol=1e-3, rtol=1e-3)

    # Reference 2: original f32 module semantics (concat + fc1 + ReLU + fc2);
    # looser tolerance because the frozen weights are streamed in bf16.
    feat_cat = jnp.concatenate((f, f), axis=1)
    h32 = jnp.maximum(feat_cat @ raw["w1"].T + raw["b1"], 0.0)
    ref_f32 = (h32 @ raw["w2"].T + raw["b2"])[:, None, :]
    assert jnp.allclose(out, ref_f32, atol=3e-2, rtol=3e-2)

    print("KERNEL_OK")
</pallas_src>

<mosaic_0001>
module attributes {stable_mosaic.version = 11 : i64} {
  func.func @_mlp_head_kernel(%arg0: i32, %arg1: i32, %arg2: memref<2x4096xbf16, #tpu.memory_space<vmem>>, %arg3: memref<4096x256xbf16, #tpu.memory_space<vmem>>, %arg4: memref<1x256xf32, #tpu.memory_space<vmem>>, %arg5: memref<256x16xf32, #tpu.memory_space<vmem>>, %arg6: memref<1x2x16xf32, #tpu.memory_space<vmem>>, %arg7: memref<2x256xf32, #tpu.memory_space<vmem>>) attributes {dimension_semantics = [#tpu.dimension_semantics<parallel>, #tpu.dimension_semantics<arbitrary>], iteration_bounds = array<i64: 2, 2>, scalar_prefetch = 0 : i64, scratch_operands = 1 : i64, tpu.core_type = #tpu.core_type<tc>, window_params = [{transform_indices = @transform_0, window_bounds = array<i64: 2, 4096>}, {transform_indices = @transform_1, window_bounds = array<i64: 4096, 256>}, {transform_indices = @transform_2, window_bounds = array<i64: 1, 256>}, {transform_indices = @transform_3, window_bounds = array<i64: 256, 16>}, {transform_indices = @transform_4, window_bounds = array<i64: 1, 2, 16>}]} {
    %c0_i32 = arith.constant 0 : i32
    %0 = arith.cmpi eq, %arg1, %c0_i32 : i32
    %1 = arith.extui %0 : i1 to i32
    %c0_i32_0 = arith.constant 0 : i32
    %2 = arith.cmpi ne, %1, %c0_i32_0 : i32
    scf.if %2 {
      %c0_9 = arith.constant 0 : index
      %c0_10 = arith.constant 0 : index
      %12 = vector.load %arg4[%c0_9, %c0_10] : memref<1x256xf32, #tpu.memory_space<vmem>>, vector<1x256xf32>
      %13 = vector.shape_cast %12 : vector<1x256xf32> to vector<1x256xf32>
      %14 = vector.broadcast %13 : vector<1x256xf32> to vector<2x256xf32>
      %c0_11 = arith.constant 0 : index
      %c0_12 = arith.constant 0 : index
      %15 = vector.load %arg7[%c0_11, %c0_12] : memref<2x256xf32, #tpu.memory_space<vmem>>, vector<2x256xf32>
      tpu.vector_store %arg7[%c0_11, %c0_12], %14 {strides = array<i32>} : memref<2x256xf32, #tpu.memory_space<vmem>>, vector<2x256xf32>,
    } else {
    }
    %c0 = arith.constant 0 : index
    %c0_1 = arith.constant 0 : index
    %3 = vector.load %arg7[%c0, %c0_1] : memref<2x256xf32, #tpu.memory_space<vmem>>, vector<2x256xf32>
    %c0_2 = arith.constant 0 : index
    %c0_3 = arith.constant 0 : index
    %4 = vector.load %arg2[%c0_2, %c0_3] : memref<2x4096xbf16, #tpu.memory_space<vmem>>, vector<2x4096xbf16>
    %c0_4 = arith.constant 0 : index
    %c0_5 = arith.constant 0 : index
    %5 = vector.load %arg3[%c0_4, %c0_5] : memref<4096x256xbf16, #tpu.memory_space<vmem>>, vector<4096x256xbf16>
    %cst = arith.constant dense<0.000000e+00> : vector<2x256xf32>
    %6 = tpu.matmul %4, %5, %cst {dimension_numbers = #tpu.dot_dimension_numbers<[1], [0], [0], [1], [0, 0, 1, 1], [], []>} : vector<2x4096xbf16>, vector<4096x256xbf16>, vector<2x256xf32> -> vector<2x256xf32>
    %7 = arith.addf %3, %6 : vector<2x256xf32>
    %c0_6 = arith.constant 0 : index
    %c0_7 = arith.constant 0 : index
    %8 = vector.load %arg7[%c0_6, %c0_7] : memref<2x256xf32, #tpu.memory_space<vmem>>, vector<2x256xf32>
    tpu.vector_store %arg7[%c0_6, %c0_7], %7 {strides = array<i32>} : memref<2x256xf32, #tpu.memory_space<vmem>>, vector<2x256xf32>,
    %c1_i32 = arith.constant 1 : i32
    %9 = arith.cmpi eq, %arg1, %c1_i32 : i32
    %10 = arith.extui %9 : i1 to i32
    %c0_i32_8 = arith.constant 0 : i32
    %11 = arith.cmpi ne, %10, %c0_i32_8 : i32
    scf.if %11 {
      %c0_9 = arith.constant 0 : index
      %c0_10 = arith.constant 0 : index
      %12 = vector.load %arg7[%c0_9, %c0_10] : memref<2x256xf32, #tpu.memory_space<vmem>>, vector<2x256xf32>
      %cst_11 = arith.constant 0.000000e+00 : f32
      %13 = vector.broadcast %cst_11 : f32 to vector<2x256xf32>
      %14 = arith.maximumf %12, %13 : vector<2x256xf32>
      %c0_12 = arith.constant 0 : index
      %c0_13 = arith.constant 0 : index
      %15 = vector.load %arg5[%c0_12, %c0_13] : memref<256x16xf32, #tpu.memory_space<vmem>>, vector<256x16xf32>
      %cst_14 = arith.constant dense<0.000000e+00> : vector<2x16xf32>
      %16 = tpu.matmul %14, %15, %cst_14 {dimension_numbers = #tpu.dot_dimension_numbers<[1], [0], [0], [1], [0, 0, 1, 1], [], []>} : vector<2x256xf32>, vector<256x16xf32>, vector<2x16xf32> -> vector<2x16xf32>
      %17 = vector.shape_cast %16 : vector<2x16xf32> to vector<1x2x16xf32>
      %c0_15 = arith.constant 0 : index
      %c0_16 = arith.constant 0 : index
      %c0_17 = arith.constant 0 : index
      %18 = vector.load %arg6[%c0_15, %c0_16, %c0_17] : memref<1x2x16xf32, #tpu.memory_space<vmem>>, vector<1x2x16xf32>
      tpu.vector_store %arg6[%c0_15, %c0_16, %c0_17], %17 {strides = array<i32>} : memref<1x2x16xf32, #tpu.memory_space<vmem>>, vector<1x2x16xf32>,
    } else {
    }
    return
  }
  func.func @transform_0(%arg0: i32, %arg1: i32) -> (i32, i32) {
    %c0_i32 = arith.constant 0 : i32
    %c0_i32_0 = arith.constant 0 : i32
    return %c0_i32, %arg1 : i32, i32
  }
  func.func @transform_1(%arg0: i32, %arg1: i32) -> (i32, i32) {
    %c0_i32 = arith.constant 0 : i32
    return %arg1, %arg0 : i32, i32
  }
  func.func @transform_2(%arg0: i32, %arg1: i32) -> (i32, i32) {
    %c0_i32 = arith.constant 0 : i32
    %c0_i32_0 = arith.constant 0 : i32
    return %c0_i32, %arg0 : i32, i32
  }
  func.func @transform_3(%arg0: i32, %arg1: i32) -> (i32, i32) {
    %c0_i32 = arith.constant 0 : i32
    %c0_i32_0 = arith.constant 0 : i32
    return %arg0, %c0_i32 : i32, i32
  }
  func.func @transform_4(%arg0: i32, %arg1: i32) -> (i32, i32, i32) {
    %c0_i32 = arith.constant 0 : i32
    %c0_i32_0 = arith.constant 0 : i32
    %c0_i32_1 = arith.constant 0 : i32
    return %arg0, %c0_i32, %c0_i32_0 : i32, i32, i32
  }
}

</mosaic_0001>

<bundles_post_ra>
// kernel: state2keyframe_head.1
= control target key start
LH: loop header
LB: loop body
LE: loop exit
PB: predicated region body
PF: predicated region fallthrough
CT: control target
= control target key end

     0   :  { %s7585_s0 = inlined_call_operand.hbm [shape: bf16[2,8192], index: 0, kind: input, shape index: {}]   ;;  %s7586_s1 = inlined_call_operand.hbm [shape: bf16[8192,512], index: 1, kind: input, shape index: {}]   ;;  %s7587_s2 = inlined_call_operand.hbm [shape: f32[1,512], index: 2, kind: input, shape index: {}]   ;;  %s7588_s3 = inlined_call_operand.vmem [shape: f32[512,16], index: 3, kind: input, shape index: {}]   ;;  %s7589_s4 = inlined_call_operand.hbm [shape: f32[2,2,16], index: 4, kind: output, shape index: {}]  }
   0x1   :  { %7602 = sst [smem:[#allocation20_spill]] %s7585_s0 }
   0x2   :  { %7603 = sst [smem:[#allocation21_spill]] %s7586_s1 }
   0x3   :  { %7604 = sst [smem:[#allocation22_spill]] %s7588_s3 }
   0x4   :  { %7605 = sst [smem:[#allocation23_spill]] %s7589_s4 }
   0x5   :  { %9 = vsyncpa [#allocation4], 0 }
   0x6   :  { %11 = vsyncpa [#allocation4 + $0x1], 0 }
   0x7   :  { %12 = vsyncpa [#allocation7], 0 }
   0x8   :  { %14 = vsyncpa [#allocation7 + $0x1], 0 }
   0x9   :  { %15 = vsyncpa [#allocation5], 0 }
   0xa   :  { %17 = vsyncpa [#allocation5 + $0x1], 0  ;;  %s6470_s15 = smov 0   ;;  %s6472_s16 = smov 0  }
   0xb   :  { %s6474_s17 = smov 0   ;;  %s6476_s18 = smov 0  }
   0xc   :  { %s6478_s19 = smov 0   ;;  %s6480_s20 = smov 0  }
   0xd   :  { %s6482_s21 = smov 0   ;;  %s6484_s22 = smov 0  }
   0xe   :  { %s6486_s23 = smov 0   ;;  %s6488_s24 = smov 0  }
   0xf   :  { %s6490_s25 = smov 0   ;;  %s6492_s26 = smov 0  }
  0x10   :  { %s6494_s27 = smov 0   ;;  %s6496_s28 = smov 0  }
  0x11 LB: > { %7606 = sst [smem:[#allocation14_spill]] %s6414_s23  ;;  %p7592_p0 = scmp.eq.s32.totalorder %s6434_s28, 0  ;;  %s6434_s28 = sphi %s6496_s28, %s23_s28   ;;  %s6430_s27 = sphi %s6494_s27, %s7648_s27   ;;  %s6426_s26 = sphi %s6492_s26, %s7659_s26   ;;  %s6422_s25 = sphi %s6490_s25, %s7646_s25   ;;  %s6418_s24 = sphi %s6488_s24, %s7658_s24   ;;  %s6414_s23 = sphi %s6486_s23, %s7645_s23   ;;  %s6410_s22 = sphi %s6484_s22, %s7657_s22   ;;  %s6406_s21 = sphi %s6482_s21, %s7656_s21   ;;  %s6402_s20 = sphi %s6480_s20, %s7655_s20   ;;  %s6398_s19 = sphi %s6478_s19, %s7654_s19   ;;  %s6394_s18 = sphi %s6476_s18, %s7653_s18   ;;  %s6390_s17 = sphi %s6474_s17, %s7652_s17   ;;  %s6386_s16 = sphi %s6472_s16, %s7651_s16   ;;  %s6382_s15 = sphi %s6470_s15, %s7650_s15  }
  0x12   : > { %7607 = sst [smem:[#allocation15_spill]] %s6418_s24  ;;  %p77_p1 = scmp.ne.s32.totalorder %s6402_s20, %s6398_s19 }
  0x13   : > { %7608 = sst [smem:[#allocation16_spill]] %s6430_s27  ;;  %p7591_p4 = scmp.lt.s32.totalorder %s6434_s28, 4 }
  0x14   : > { %p79_p3 = por %p77_p1, %p7592_p0  ;;  %s204_s5 = sand.u32 1, %s6434_s28  }
  0x15   : > { %s206_s6 = sand.u32 1, %s6402_s20   ;;  %s4617_s8 = sshll.u32 %s6430_s27, 1 }
  0x16   : > { %s4615_s7 = sshll.u32 %s206_s6, 12  ;;  %s5150_s9 = sshll.u32 %s6426_s26, 11 }
  0x17   : > { %s208_s10 = scalar_lea.vmem [#allocation6], %s4615_s7  ;;  %s215_s12 = sadd.s32 %s5150_s9, %s4617_s8 }
  0x18   : > { %s218_s11 = sshll.u32 %s208_s10, 4  ;;  %s4619_s13 = sshll.u32 %s215_s12, 6  ;;  %s6554_s11 = int_to_ptr.vmem [resolvable:$true] %s218_s11 }
  0x19   : > { %p6558_p5 = pnand %p7591_p4, %p79_p3  ;;  %s7610_s1 = sld [smem:[#allocation21_spill]] }
  0x1a   : > { %p4623_p6 = scmp.ge.s32.totalorder %s6434_s28, 1  ;;  %s6568_s6 = scalar_lea.sflag [#allocation7], %s204_s5 }
  0x1b   : > { %p6192_p8 = pneg %p6558_p5 }
  0x1f   : > { %s6565_s4 = scalar_lea.hbm %s7610_s1, %s4619_s13  ;;  %s6195_s8 = scalar_lea.hbm %s7610_s1, 262144 }
  0x20   : > { %s6190_s7 = scalar_lea.hbm %s6565_s4, 65536  ;;  %p6196_p11 = scmp.lt.u32.totalorder %s6565_s4, %s7610_s1 }
  0x21   : > { %p6191_p7 = scmp.ne.s32.totalorder %s6565_s4, %s6190_s7  ;;  %p6197_p12 = scmp.lt.u32.totalorder %s6195_s8, %s6190_s7 }
  0x22   : > { %p6199_p1 = scmp.lt.u32.totalorder %s6190_s7, %s6565_s4 }
  0x23   : > { %p6193_p9 = pnand %p6192_p8, %p6191_p7  ;;  %p6198_p13 = por %p6197_p12, %p6196_p11 }
  0x25   : > { %p6194_p10 = pneg %p6193_p9  ;;  %p6200_p3 = por %p6199_p1, %p6198_p13 }
  0x27   : > { %p6201_p4 = pnand %p6200_p3, %p6194_p10 }
  0x29   : > { %6204 = shalt.err (!%p6201_p4)
}
  0x2a   : > { %s6205_s5 = scalar_lea.vmem %s6554_s11, 65536  ;;  %s6436_s12 = smov [#allocation6]  }
  0x2b   : > { %p6206_p7 = scmp.ne.s32.totalorder %s6554_s11, %s6205_s5  ;;  %s6210_s13 = sshll.u32 %s6436_s12, 4  ;;  %s6211_s13 = int_to_ptr.vmem [resolvable:$false] %s6210_s13 }
  0x2c   : > { %s6212_s29 = scalar_lea.vmem %s6211_s13, 131072  ;;  %p6213_p0 = scmp.lt.s32.totalorder %s6554_s11, %s6211_s13 }
  0x2d   : > { %p6208_p9 = pnand %p6206_p7, %p6192_p8  ;;  %p6214_p11 = scmp.lt.s32.totalorder %s6212_s29, %s6205_s5 }
  0x2f   : > { %p6209_p2 = pneg %p6208_p9  ;;  %p6215_p12 = por %p6214_p11, %p6213_p0 }
  0x31   : > { %p6216_p13 = pnand %p6215_p12, %p6209_p2 }
  0x33   : > { %6219 = shalt.err (!%p6216_p13)
}
  0x34   : > { %s6437_s7 = smov 256   ;;  %s6438_s30 = smov 128  }
  0x35   : > { %s6439_s8 = smov 8   ;;  %p254_p0 = scmp.lt.s32.totalorder %s6434_s28, 5 }
  0x36   : > { %5291 = dma.hbm_to_vmem [thread:$0]  (!%p6558_p5), %s6565_s4, 65536, %s6554_s11, %s6568_s6, %s6437_s7, %s6438_s30, %s6439_s8  }
  0x37   : > { %p6599_p2 = pnand %p4623_p6, %p254_p0  ;;  %s6604_s10 = sadd.s32 4294967295, %s6434_s28  }
  0x38   : > { %s32_s5 = sadd.s32 1, %s6426_s26  ;;  %s42_s12 = sadd.s32 1, %s6414_s23 }
  0x39   : > { %s7611_s9 = scalar_select %p6599_p2, 1, 0 }
  0x3a   : > { %p33_p4 = scmp.ge.s32.totalorder %s32_s5, 2  ;;  %p49_p5 = scmp.ne.s32.totalorder %s6414_s23, %s6410_s22 }
  0x3b   : > { %p55_p8 = scmp.ne.s32.totalorder %s6410_s22, %s6406_s21  ;;  %s7613_s4 = sadd.s32 1, %s6430_s27 }
  0x3c   : > { %s7661_s5 = smov (%p33_p4, %s32_s5), 0  ;;  %s7663_s4 = smov (!%p33_p4, %s7613_s4), %s6430_s27 }
  0x3d   : > { %7612 = sst [smem:[#allocation17_spill]] %s7661_s5  ;;  %s39_s11 = ssub.s32 %s6426_s26, %s7661_s5 }
  0x3e   : > { %p7614_p6 = scmp.eq.s32.totalorder %s6434_s28, 0  ;;  %p37_p1 = scmp.ge.s32.totalorder %s7663_s4, 2 }
  0x3f   : > { %p40_p3 = scmp.eq.s32.totalorder %s39_s11, 0  ;;  %p7595_p7 = scmp.eq.s32.totalorder %s6604_s10, 0 }
  0x40   : > { %p6621_p10 = por %p7614_p6, %p49_p5  ;;  %s185_s21 = sand.u32 1, %s6414_s23  }
  0x41   : > { %s7665_s4 = smov (%p37_p1, %s7663_s4), 0  ;;  %p6634_p9 = por %p7595_p7, %p55_p8 }
  0x42   : > { %7616 = sst [smem:[#allocation18_spill]] %s7665_s4  ;;  %s6640_s7 = ssub.s32 %s6430_s27, %s7665_s4 }
  0x43   : > { %s6630_s13 = scalar_select %p40_p3, %s6414_s23, %s42_s12  }
  0x44   : > { %s7618_s29 = scalar_select %p6634_p9, 1, 0 }
  0x45   : > { %7617 = sst [smem:[#allocation19_spill]] %s6630_s13  ;;  %s67_s30 = sor.u32 %s6640_s7, %s39_s11 }
  0x46   : > { %p7619_p11 = scmp.ne.s32.totalorder %s6398_s19, %s6394_s18  ;;  %p68_p13 = scmp.eq.s32.totalorder %s67_s30, 0 }
  0x47   : > { %s4612_s1 = sshll.u32 %s185_s21, 5  ;;  %s5149_s5 = sshll.u32 %s6426_s26, 9 }
  0x48   : > { %p6648_p12 = por %p7619_p11, %p7595_p7  ;;  %s7621_s12 = sadd.s32 1, %s6402_s20 }
  0x49   : > { %s6656_s13 = scalar_select %p68_p13, %s6402_s20, %s7621_s12  }
  0x4a   : > { %s7620_s8 = scalar_select %p6648_p12, 1, 0 }
  0x4b   : > { %s7622_s0 = sld [smem:[#allocation20_spill]]  ;;  %s189_s18 = scalar_lea.vmem [#allocation3], %s4612_s1 }
  0x4c   : > { %s197_s11 = sshll.u32 %s189_s18, 4  ;;  %p7623_p0 = scmp.lt.s32.totalorder %s6434_s28, 4  ;;  %s6671_s11 = int_to_ptr.vmem [resolvable:$true] %s197_s11 }
  0x4d   : > { %s186_s12 = scalar_lea.sflag [#allocation4], %s185_s21 }
  0x4e   : > { %p6667_p4 = pnand %p7623_p0, %p6621_p10 }
  0x50   : > { %p6222_p8 = pneg %p6667_p4 }
  0x51   : > { %s6661_s3 = scalar_lea.hbm %s7622_s0, %s5149_s5  ;;  %s6225_s5 = scalar_lea.hbm %s7622_s0, 1024 }
  0x52   : > { %s6220_s23 = scalar_lea.hbm %s6661_s3, 512  ;;  %p6226_p10 = scmp.lt.u32.totalorder %s6661_s3, %s7622_s0 }
  0x53   : > { %p6221_p5 = scmp.ne.s32.totalorder %s6661_s3, %s6220_s23  ;;  %p6227_p3 = scmp.lt.u32.totalorder %s6225_s5, %s6220_s23 }
  0x54   : > { %p6229_p13 = scmp.lt.u32.totalorder %s6220_s23, %s6661_s3 }
  0x55   : > { %p6223_p6 = pnand %p6222_p8, %p6221_p5  ;;  %p6228_p11 = por %p6227_p3, %p6226_p10 }
  0x57   : > { %p6224_p1 = pneg %p6223_p6  ;;  %p6230_p0 = por %p6229_p13, %p6228_p11 }
  0x59   : > { %p6231_p7 = pnand %p6230_p0, %p6224_p1 }
  0x5b   : > { %6234 = shalt.err (!%p6231_p7)
}
  0x5c   : > { %s6235_s21 = scalar_lea.vmem %s6671_s11, 512  ;;  %s6440_s1 = smov [#allocation3]  }
  0x5d   : > { %p6236_p5 = scmp.ne.s32.totalorder %s6671_s11, %s6235_s21  ;;  %s6240_s24 = sshll.u32 %s6440_s1, 4  ;;  %s6241_s24 = int_to_ptr.vmem [resolvable:$false] %s6240_s24 }
  0x5e   : > { %s6242_s14 = scalar_lea.vmem %s6241_s24, 1024  ;;  %p6243_p9 = scmp.lt.s32.totalorder %s6671_s11, %s6241_s24 }
  0x5f   : > { %p6238_p6 = pnand %p6236_p5, %p6222_p8  ;;  %p6244_p10 = scmp.lt.s32.totalorder %s6242_s14, %s6235_s21 }
  0x61   : > { %p6239_p12 = pneg %p6238_p6  ;;  %p6245_p3 = por %p6244_p10, %p6243_p9 }
  0x63   : > { %p6246_p11 = pnand %p6245_p3, %p6239_p12 }
  0x65   : > { %6249 = shalt.err (!%p6246_p11)
}
  0x66   : > { %5288 = dma.hbm_to_vmem [thread:$0]  (!%p6667_p4), %s6661_s3, 512, %s6671_s11, %s186_s12  }
  0x67   : > { %s4609_s23 = sadd.s32 4294967294, %s6434_s28   ;;  %p94_p7 = scmp.eq.s32.totalorder %s6640_s7, 0 }
  0x68   : > { %s96_s5 = sadd.s32 1, %s6390_s17  ;;  %p103_p9 = scmp.ne.s32.totalorder %s6390_s17, %s6386_s16 }
  0x69   : > { %s6704_s30 = scalar_select %p94_p7, %s6390_s17, %s96_s5  }
  0x6a   : > { %p7625_p12 = scmp.eq.s32.totalorder %s6434_s28, 0  ;;  %p109_p1 = scmp.ne.s32.totalorder %s6386_s16, %s6382_s15 }
  0x6b   : > { %p159_p13 = scmp.eq.s32.totalorder %s6604_s10, 3  ;;  %p165_p0 = scmp.eq.s32.totalorder %s4609_s23, 3 }
  0x6c   : > { %p6708_p8 = por %p103_p9, %p7625_p12  ;;  %p7627_p5 = scmp.eq.s32.totalorder %s6604_s10, 0 }
  0x6d   : > { %s230_s3 = sand.u32 1, %s6390_s17   ;;  %p6722_p4 = por %p159_p13, %p103_p9 }
  0x6e   : > { %p6717_p6 = por %p109_p1, %p7627_p5  ;;  %p6726_p10 = por %p165_p0, %p109_p1 }
  0x6f   : > { %s7629_s7 = scalar_select %p6722_p4, 1, 0 }
  0x70   : > { %s7628_s21 = scalar_select %p6717_p6, 1, 0 }
  0x71   : > { %s7630_s11 = scalar_select %p6726_p10, 1, 0 }
  0x72   : > { %s4620_s12 = sshll.u32 %s230_s3, 1  ;;  %s5151_s1 = sshll.u32 %s6430_s27, 5 }
  0x73   : > { %s6734_s23 = scalar_lea.hbm %s7587_s2, %s5151_s1  ;;  %s232_s5 = scalar_lea.vmem [#allocation8], %s4620_s12 }
  0x74   : > { %s240_s0 = sshll.u32 %s232_s5, 4  ;;  %p7631_p3 = scmp.lt.s32.totalorder %s6434_s28, 4  ;;  %s241_s0 = int_to_ptr.vmem [resolvable:$true] %s240_s0 }
  0x75   : > { %s6250_s3 = scalar_lea.hbm %s6734_s23, 32  ;;  %s6255_s18 = scalar_lea.hbm %s7587_s2, 64 }
  0x76   : > { %p6740_p11 = pnand %p7631_p3, %p6708_p8  ;;  %p6251_p7 = scmp.ne.s32.totalorder %s6734_s23, %s6250_s3 }
  0x77   : > { %p6256_p8 = scmp.lt.u32.totalorder %s6734_s23, %s7587_s2  ;;  %p6257_p13 = scmp.lt.u32.totalorder %s6255_s18, %s6250_s3 }
  0x78   : > { %p6252_p9 = pneg %p6740_p11  ;;  %p6259_p5 = scmp.lt.u32.totalorder %s6250_s3, %s6734_s23 }
  0x79   : > { %p6258_p0 = por %p6257_p13, %p6256_p8 }
  0x7a   : > { %p6253_p12 = pnand %p6252_p9, %p6251_p7 }
  0x7b   : > { %p6260_p3 = por %p6259_p5, %p6258_p0 }
  0x7c   : > { %p6254_p1 = pneg %p6253_p12 }
  0x7e   : > { %p6261_p10 = pnand %p6260_p3, %p6254_p1 }
  0x80   : > { %6264 = shalt.err (!%p6261_p10)
}
  0x81   : > { %s6265_s5 = scalar_lea.vmem %s241_s0, 32  ;;  %s6441_s27 = smov [#allocation8]  }
  0x82   : > { %p6266_p4 = scmp.ne.s32.totalorder %s241_s0, %s6265_s5  ;;  %s6270_s1 = sshll.u32 %s6441_s27, 4  ;;  %s6271_s1 = int_to_ptr.vmem [resolvable:$false] %s6270_s1 }
  0x83   : > { %s6272_s12 = scalar_lea.vmem %s6271_s1, 64  ;;  %p6273_p6 = scmp.lt.s32.totalorder %s241_s0, %s6271_s1 }
  0x84   : > { %p6268_p7 = pnand %p6266_p4, %p6252_p9  ;;  %p6274_p2 = scmp.lt.s32.totalorder %s6272_s12, %s6265_s5 }
  0x86   : > { %p6269_p12 = pneg %p6268_p7  ;;  %p6275_p8 = por %p6274_p2, %p6273_p6 }
  0x88   : > { %p6276_p13 = pnand %p6275_p8, %p6269_p12 }
  0x8a   : > { %6279 = shalt.err (!%p6276_p13)
}
  0x8b   : > { %5294 = dma.hbm_to_vmem [thread:$0]  (!%p6740_p11), %s6734_s23, 32, %s241_s0, %s6568_s6  }
  0x8c   : > { %p7633_p10 = scmp.ne.s32.totalorder %s7611_s9, 0 }
  0x8d   : > { %s260_s3 = sand.u32 (!%p7633_p10), 1, %s6410_s22   ;;  %p7634_p4 = scmp.ne.s32.totalorder (!%p7633_p10), %s7618_s29, 0 }
  0x8e   : > { %258 = sbr.rel (%p7633_p10) target bundleno = 1171 (0x493), region = 36  ;;  %s4624_s18 = sshll.u32 (!%p7633_p10), %s260_s3, 5 }
  0x8f   : > { %s261_s27 = scalar_lea.sflag (!%p7633_p10), [#allocation4], %s260_s3  ;;  %s6769_s24 = scalar_lea.vmem (!%p7633_p10), [#allocation3], %s4624_s18 }
  0x95   : > { %6365 = dma.done.wait (%p7634_p4), %s261_s27, 512  }
  0x96   : > { %6367 = vsyncadd (%p7634_p4), %s261_s27, 4294966784  ;;  %s269_s4 = sand.u32 1, %s6604_s10   ;;  %s271_s0 = sand.u32 1, %s6398_s19  }
  0x97   : > { %s4625_s6 = sshll.u32 %s271_s0, 12  ;;  %s270_s9 = scalar_lea.sflag [#allocation7], %s269_s4 }
  0x98   : > { %s6777_s23 = scalar_lea.vmem [#allocation6], %s4625_s6  ;;  %p7635_p2 = scmp.ne.s32.totalorder %s7620_s8, 0 }
  0x9a   : > { %6369 = dma.done.wait (%p7635_p2), %s270_s9, 65536  }
  0x9b   : > { %6371 = vsyncadd (%p7635_p2), %s270_s9, 4294901760  ;;  %s280_s14 = sand.u32 1, %s6386_s16   ;;  %p7636_p6 = scmp.ne.s32.totalorder %s7628_s21, 0 }
  0x9c   : > { %s6786_s29 = sshll.u32 %s280_s14, 1 }
  0x9d   : > { %s282_s5 = scalar_lea.vmem [#allocation8], %s6786_s29 }
  0x9e   : > { %6373 = dma.done.wait (%p7636_p6), %s270_s9, 32  }
  0x9f   : > { %6375 = vsyncadd (%p7636_p6), %s270_s9, 4294967264  ;;  %s6794_s10 = sshll.u32 %s6422_s25, 5  ;;  %s7637_s18 = sld [smem:[#allocation22_spill]] }
  0xa0   : > { %p327_p11 = scmp.lt.s32.totalorder %s6794_s10, 63  ;;  %s321_s4 = scalar_lea.vmem [#allocation9], %s6786_s29 }
  0xa1   : > { %s7638_s0 = sld [smem:[#allocation15_spill]] }
  0xa2   : > { %s328_s8 = scalar_select %p327_p11, %s6794_s10, 63 }
  0xa4   : > { %s4629_s1 = sshll.u32 %s328_s8, 3 }
  0xa5   : > { %s6801_s27 = scalar_lea.vmem %s7637_s18, %s4629_s1 }
  0xa7   : > { %p4630_p9 = scmp.ne.s32.totalorder %s7638_s0, 0 }
  0xa8   : > { %v338_v0 = vlaneseq (!%p4630_p9)  ;;  %v336_v2 = vld [vmem:[%s282_s5] sm:$0x3] (!%p4630_p9) }
  0xa9   : > { %335 = sbr.rel (%p4630_p9) target bundleno = 179 (0xb3), region = 52 }
  0xaa   : > { %v339_v1 = vshrl.u32 (!%p4630_p9), %v338_v0, 7 }
  0xac   : > { %v340_v3 = vsub.s32 (!%p4630_p9), 0, %v339_v1  ;;  %v344_v4 = vsub.s32 (!%p4630_p9), 1, %v339_v1 }
  0xae   : > { %v341_v5 = vrot.slane (!%p4630_p9), %v336_v2, %v340_v3  ;;  %v345_v6 = vrot.slane (!%p4630_p9), %v336_v2, %v344_v4 }
  0xb0   : > { %v346_v7 = vcombine.low %v341_v5, %v345_v6 }
  0xb2   : > { %4631 = vst.sshfl [vmem:[#allocation2] sm:$0x33 pattern:$0x76325410] %v346_v7 }
  0xb3 PF: > { %v5418_v8 = vld [vmem:[%s6777_s23 + $0x4] ss:$8 sps:$4 sm:$0xff]   ;;  %v5422_v10 = vld [vmem:[%s6777_s23] ss:$8 sps:$4 sm:$0xff]   ;;  %v5424_v12 = vld [vmem:[%s6777_s23 + $0x14] ss:$8 sps:$4 sm:$0xff]   ;;  %v881_v46 = vlaneseq }
  0xb4   : > { %v5420_v9 = vld [vmem:[%s6777_s23 + $0x804] ss:$8 sps:$4 sm:$0xff]   ;;  %3665 = vmatprep.subr.bf16.mxu1 %v5418_v8  ;;  %v5423_v11 = vld [vmem:[%s6777_s23 + $0x800] ss:$8 sps:$4 sm:$0xff]   ;;  %v5426_v13 = vld [vmem:[%s6777_s23 + $0x814] ss:$8 sps:$4 sm:$0xff]  }
  0xb5   : > { %3993 = vmatprep.subr.bf16.mxu0 %v5420_v9  ;;  %3666 = vmatpush1.bf16.msra.mxu1 %v5422_v10  ;;  %v5428_v14 = vld [vmem:[%s6777_s23 + $0x10] ss:$8 sps:$4 sm:$0xff]   ;;  %v5430_v16 = vld [vmem:[%s6777_s23 + $0x24] ss:$8 sps:$4 sm:$0xff]   ;;  %v5434_v18 = vld [vmem:[%s6777_s23 + $0x20] ss:$8 sps:$4 sm:$0xff]  }
  0xb6   : > { %3994 = vmatpush1.bf16.msra.mxu0 %v5423_v11  ;;  %3667 = vmatprep.subr.bf16.mxu1 %v5424_v12  ;;  %v5429_v15 = vld [vmem:[%s6777_s23 + $0x810] ss:$8 sps:$4 sm:$0xff]   ;;  %v5432_v17 = vld [vmem:[%s6777_s23 + $0x824] ss:$8 sps:$4 sm:$0xff]   ;;  %v5435_v19 = vld [vmem:[%s6777_s23 + $0x820] ss:$8 sps:$4 sm:$0xff]  }
  0xb7   : > { %3995 = vmatprep.subr.bf16.mxu0 %v5426_v13  ;;  %v5436_v20 = vld [vmem:[%s6777_s23 + $0x34] ss:$8 sps:$4 sm:$0xff]   ;;  %v5440_v22 = vld [vmem:[%s6777_s23 + $0x30] ss:$8 sps:$4 sm:$0xff]   ;;  %v5442_v24 = vld [vmem:[%s6777_s23 + $0x44] ss:$8 sps:$4 sm:$0xff]  }
  0xb8   : > { %v5438_v21 = vld [vmem:[%s6777_s23 + $0x834] ss:$8 sps:$4 sm:$0xff]   ;;  %v5441_v23 = vld [vmem:[%s6777_s23 + $0x830] ss:$8 sps:$4 sm:$0xff]   ;;  %v5444_v25 = vld [vmem:[%s6777_s23 + $0x844] ss:$8 sps:$4 sm:$0xff]  }
  0xb9   : > { %3668 = vmatpush1.bf16.msra.mxu1 %v5428_v14  ;;  %v5446_v26 = vld [vmem:[%s6777_s23 + $0x40] ss:$8 sps:$4 sm:$0xff]   ;;  %v5448_v28 = vld [vmem:[%s6777_s23 + $0x54] ss:$8 sps:$4 sm:$0xff]   ;;  %v5452_v30 = vld [vmem:[%s6777_s23 + $0x50] ss:$8 sps:$4 sm:$0xff]  }
  0xba   : > { %3996 = vmatpush1.bf16.msra.mxu0 %v5429_v15  ;;  %3669 = vmatprep.subr.bf16.mxu1 %v5430_v16  ;;  %v5447_v27 = vld [vmem:[%s6777_s23 + $0x840] ss:$8 sps:$4 sm:$0xff]   ;;  %v5450_v29 = vld [vmem:[%s6777_s23 + $0x854] ss:$8 sps:$4 sm:$0xff]   ;;  %v5453_v31 = vld [vmem:[%s6777_s23 + $0x850] ss:$8 sps:$4 sm:$0xff]  }
  0xbb   : > { %3997 = vmatprep.subr.bf16.mxu0 %v5432_v17  ;;  %v5454_v32 = vld [vmem:[%s6777_s23 + $0x64] ss:$8 sps:$4 sm:$0xff]   ;;  %v5458_v34 = vld [vmem:[%s6777_s23 + $0x60] ss:$8 sps:$4 sm:$0xff]   ;;  %v5460_v36 = vld [vmem:[%s6777_s23 + $0x74] ss:$8 sps:$4 sm:$0xff]  }
  0xbc   : > { %v5456_v33 = vld [vmem:[%s6777_s23 + $0x864] ss:$8 sps:$4 sm:$0xff]   ;;  %v5459_v35 = vld [vmem:[%s6777_s23 + $0x860] ss:$8 sps:$4 sm:$0xff]   ;;  %v5462_v37 = vld [vmem:[%s6777_s23 + $0x874] ss:$8 sps:$4 sm:$0xff]  }
  0xbd   : > { %3670 = vmatpush1.bf16.msra.mxu1 %v5434_v18  ;;  %v5464_v38 = vld [vmem:[%s6777_s23 + $0x70] ss:$8 sps:$4 sm:$0xff]   ;;  %v5466_v40 = vld [vmem:[%s6777_s23 + $0x84] ss:$8 sps:$4 sm:$0xff]   ;;  %v5470_v42 = vld [vmem:[%s6777_s23 + $0x80] ss:$8 sps:$4 sm:$0xff]  }
  0xbe   : > { %3998 = vmatpush1.bf16.msra.mxu0 %v5435_v19  ;;  %3671 = vmatprep.subr.bf16.mxu1 %v5436_v20  ;;  %v5465_v39 = vld [vmem:[%s6777_s23 + $0x870] ss:$8 sps:$4 sm:$0xff]   ;;  %v5468_v41 = vld [vmem:[%s6777_s23 + $0x884] ss:$8 sps:$4 sm:$0xff]   ;;  %v5471_v43 = vld [vmem:[%s6777_s23 + $0x880] ss:$8 sps:$4 sm:$0xff]  }
  0xbf   : > { %3999 = vmatprep.subr.bf16.mxu0 %v5438_v21  ;;  %v6442_v44 = vmov 1966171168   ;;  %v5472_v47 = vld [vmem:[%s6777_s23 + $0x94] ss:$8 sps:$4 sm:$0xff]   ;;  %v5476_v49 = vld [vmem:[%s6777_s23 + $0x90] ss:$8 sps:$4 sm:$0xff]  }
  0xc0   : > { %v879_v45 = vunpack.c.l.s4 %v6442_v44  ;;  %v5474_v48 = vld [vmem:[%s6777_s23 + $0x894] ss:$8 sps:$4 sm:$0xff]   ;;  %v6844_v51 = vshrl.u32 %v881_v46, 7  ;;  %v5477_v52 = vld [vmem:[%s6777_s23 + $0x890] ss:$8 sps:$4 sm:$0xff]   ;;  %v6857_v60 = vld [vmem:[%s6769_s24] sm:$0xff] }
  0xc1   : > { %3672 = vmatpush1.bf16.msra.mxu1 %v5440_v22  ;;  %v5478_v53 = vld [vmem:[%s6777_s23 + $0xa4] ss:$8 sps:$4 sm:$0xff]   ;;  %v5482_v55 = vld [vmem:[%s6777_s23 + $0xa0] ss:$8 sps:$4 sm:$0xff]   ;;  %v5484_v58 = vld [vmem:[%s6777_s23 + $0xb4] ss:$8 sps:$4 sm:$0xff]  }
  0xc2   : > { %4000 = vmatpush1.bf16.msra.mxu0 %v5441_v23  ;;  %3673 = vmatprep.subr.bf16.mxu1 %v5442_v24  ;;  %v880_v50 = vunpack.c.0.s8 %v879_v45  ;;  %v5480_v54 = vld [vmem:[%s6777_s23 + $0x8a4] ss:$8 sps:$4 sm:$0xff]   ;;  %v5483_v56 = vld [vmem:[%s6777_s23 + $0x8a0] ss:$8 sps:$4 sm:$0xff]   ;;  %v5486_v59 = vld [vmem:[%s6777_s23 + $0x8b4] ss:$8 sps:$4 sm:$0xff]  }
  0xc3   : > { %4001 = vmatprep.subr.bf16.mxu0 %v5444_v25  ;;  %v5488_v61 = vld [vmem:[%s6777_s23 + $0xb0] ss:$8 sps:$4 sm:$0xff]   ;;  %v5490_v1 = vld [vmem:[%s6777_s23 + $0xc4] ss:$8 sps:$4 sm:$0xff]   ;;  %v5494_v7 = vld [vmem:[%s6777_s23 + $0xc0] ss:$8 sps:$4 sm:$0xff]  }
  0xc4   : > { %v6852_v57 = vsub.s32 %v880_v50, %v6844_v51  ;;  %v5489_v63 = vld [vmem:[%s6777_s23 + $0x8b0] ss:$8 sps:$4 sm:$0xff]   ;;  %v5492_v2 = vld [vmem:[%s6777_s23 + $0x8c4] ss:$8 sps:$4 sm:$0xff]   ;;  %v5495_v8 = vld [vmem:[%s6777_s23 + $0x8c0] ss:$8 sps:$4 sm:$0xff]  }
  0xc5   : > { %3674 = vmatpush1.bf16.msra.mxu1 %v5446_v26  ;;  %v6864_v0 = vld [vmem:[%s6769_s24 + $0x10] sm:$0xff]  ;;  %v5502_v14 = vld [vmem:[%s6777_s23 + $0xe4] ss:$8 sps:$4 sm:$0xff]   ;;  %v5506_v16 = vld [vmem:[%s6777_s23 + $0xe0] ss:$8 sps:$4 sm:$0xff]   ;;  %s7639_s25 = sld [smem:[#allocation15_spill]] }
  0xc6   : > { %4002 = vmatpush1.bf16.msra.mxu0 %v5447_v27  ;;  %3675 = vmatprep.subr.bf16.mxu1 %v5448_v28  ;;  %v884_v62 = vrot.slane %v6857_v60, %v6852_v57  ;;  %v982_v4 = vrot.slane %v6864_v0, %v6852_v57  ;;  %v5496_v9 = vld [vmem:[%s6777_s23 + $0xd4] ss:$8 sps:$4 sm:$0xff]   ;;  %v5500_v12 = vld [vmem:[%s6777_s23 + $0xd0] ss:$8 sps:$4 sm:$0xff]   ;;  %v5504_v15 = vld [vmem:[%s6777_s23 + $0x8e4] ss:$8 sps:$4 sm:$0xff]  }
  0xc7   : > { %4003 = vmatprep.subr.bf16.mxu0 %v5450_v29  ;;  %v5498_v10 = vld [vmem:[%s6777_s23 + $0x8d4] ss:$8 sps:$4 sm:$0xff]   ;;  %v5501_v13 = vld [vmem:[%s6777_s23 + $0x8d0] ss:$8 sps:$4 sm:$0xff]   ;;  %v5507_v17 = vld [vmem:[%s6777_s23 + $0x8e0] ss:$8 sps:$4 sm:$0xff]  }
  0xc8   : > { %v892_v3 = vcombine.high %v884_v62, %v884_v62  ;;  %v990_v6 = vcombine.high %v982_v4, %v982_v4  ;;  %v5508_v18 = vld [vmem:[%s6777_s23 + $0xf4] ss:$8 sps:$4 sm:$0xff]   ;;  %v5512_v20 = vld [vmem:[%s6777_s23 + $0xf0] ss:$8 sps:$4 sm:$0xff]   ;;  %v5517_v22 = vld [vmem:[%s6777_s23 + $0x104] ss:$8 sps:$4 sm:$0xff]   ;;  %v6889_v24 = vrot.slane %v884_v62, %v6852_v57  ;;  %v6892_v25 = vrot.slane %v982_v4, %v6852_v57 }
  0xc9   : > { %3676 = vmatpush1.bf16.msra.mxu1 %v5452_v30  ;;  %v5510_v19 = vld [vmem:[%s6777_s23 + $0x8f4] ss:$8 sps:$4 sm:$0xff]   ;;  %v5513_v21 = vld [vmem:[%s6777_s23 + $0x8f0] ss:$8 sps:$4 sm:$0xff]   ;;  %v5521_v23 = vld [vmem:[%s6777_s23 + $0x904] ss:$8 sps:$4 sm:$0xff]  }
  0xca   : > { %4004 = vmatpush1.bf16.msra.mxu0 %v5453_v31  ;;  %3677 = vmatprep.subr.bf16.mxu1 %v5454_v32  ;;  %v914_v5 = vrot.slane %v892_v3, %v6852_v57  ;;  %v1012_v11 = vrot.slane %v990_v6, %v6852_v57  ;;  %v5515_v26 = vld [vmem:[%s6777_s23 + $0x100] ss:$8 sps:$4 sm:$0xff]   ;;  %v5524_v28 = vld [vmem:[%s6777_s23 + $0x114] ss:$8 sps:$4 sm:$0xff]   ;;  %v5522_v32 = vld [vmem:[%s6777_s23 + $0x110] ss:$8 sps:$4 sm:$0xff]  }
  0xcb   : > { %4005 = vmatprep.subr.bf16.mxu0 %v5456_v33  ;;  %v5519_v27 = vld [vmem:[%s6777_s23 + $0x900] ss:$8 sps:$4 sm:$0xff]   ;;  %v5527_v29 = vld [vmem:[%s6777_s23 + $0x914] ss:$8 sps:$4 sm:$0xff]   ;;  %v5525_v33 = vld [vmem:[%s6777_s23 + $0x910] ss:$8 sps:$4 sm:$0xff]  }
  0xcc   : > { %3697 = vmatprep.mubr.bf16.mxu1 %v914_v5  ;;  %4025 = vmatprep.mubr.bf16.mxu0 %v1012_v11  ;;  %v924_v30 = vcombine.high %v914_v5, %v914_v5  ;;  %v1022_v31 = vcombine.high %v1012_v11, %v1012_v11  ;;  %v5540_v44 = vld [vmem:[%s6777_s23 + $0x140] ss:$8 sps:$4 sm:$0xff]   ;;  %v5548_v46 = vld [vmem:[%s6777_s23 + $0x154] ss:$8 sps:$4 sm:$0xff]   ;;  %v5554_v50 = vld [vmem:[%s6777_s23 + $0x164] ss:$8 sps:$4 sm:$0xff]  }
  0xcd   : > { %3678 = vmatpush1.bf16.msra.mxu1 %v5458_v34  ;;  %v5530_v34 = vld [vmem:[%s6777_s23 + $0x124] ss:$8 sps:$4 sm:$0xff]   ;;  %v5543_v45 = vld [vmem:[%s6777_s23 + $0x940] ss:$8 sps:$4 sm:$0xff]   ;;  %v5575_v3 = vld [vmem:[%s6777_s23 + $0x994] ss:$8 sps:$4 sm:$0xff]  }
  0xce   : > { %4006 = vmatpush1.bf16.msra.mxu0 %v5459_v35  ;;  %3679 = vmatprep.subr.bf16.mxu1 %v5460_v36  ;;  %v5533_v35 = vld [vmem:[%s6777_s23 + $0x924] ss:$8 sps:$4 sm:$0xff]   ;;  %v5528_v36 = vld [vmem:[%s6777_s23 + $0x120] ss:$8 sps:$4 sm:$0xff]   ;;  %v5570_v4 = vld [vmem:[%s6777_s23 + $0x190] ss:$8 sps:$4 sm:$0xff]  }
  0xcf   : > { %4007 = vmatprep.subr.bf16.mxu0 %v5462_v37  ;;  %v5531_v37 = vld [vmem:[%s6777_s23 + $0x920] ss:$8 sps:$4 sm:$0xff]   ;;  %v5569_v62 = vld [vmem:[%s6777_s23 + $0x984] ss:$8 sps:$4 sm:$0xff]   ;;  %v5573_v5 = vld [vmem:[%s6777_s23 + $0x990] ss:$8 sps:$4 sm:$0xff]  }
  0xd0   : > { %v5578_v6 = vld [vmem:[%s6777_s23 + $0x1a4] ss:$8 sps:$4 sm:$0xff]   ;;  %v5587_v11 = vld [vmem:[%s6777_s23 + $0x9b4] ss:$8 sps:$4 sm:$0xff]   ;;  %p5144_p1 = scmp.ne.s32.totalorder %s7639_s25, 1 }
  0xd1   : > { %3680 = vmatpush1.bf16.msra.mxu1 %v5464_v38  ;;  %v5536_v38 = vld [vmem:[%s6777_s23 + $0x134] ss:$8 sps:$4 sm:$0xff]   ;;  %vm4453_vm0 = vcmask (!%p5144_p1), 123904  }
  0xd2   : > { %4008 = vmatpush1.bf16.msra.mxu0 %v5465_v39  ;;  %3681 = vmatprep.subr.bf16.mxu1 %v5466_v40  ;;  %v5539_v39 = vld [vmem:[%s6777_s23 + $0x934] ss:$8 sps:$4 sm:$0xff]   ;;  %v5534_v40 = vld [vmem:[%s6777_s23 + $0x130] ss:$8 sps:$4 sm:$0xff]  }
  0xd3   : > { %4009 = vmatprep.subr.bf16.mxu0 %v5468_v41  ;;  %v5537_v41 = vld [vmem:[%s6777_s23 + $0x930] ss:$8 sps:$4 sm:$0xff]  }
  0xd5   : > { %3682 = vmatpush1.bf16.msra.mxu1 %v5470_v42  ;;  %v5542_v42 = vld [vmem:[%s6777_s23 + $0x144] ss:$8 sps:$4 sm:$0xff]  }
  0xd6   : > { %4010 = vmatpush1.bf16.msra.mxu0 %v5471_v43  ;;  %3683 = vmatprep.subr.bf16.mxu1 %v5472_v47  ;;  %v5545_v43 = vld [vmem:[%s6777_s23 + $0x944] ss:$8 sps:$4 sm:$0xff]   ;;  %v5551_v47 = vld [vmem:[%s6777_s23 + $0x954] ss:$8 sps:$4 sm:$0xff]  }
  0xd7   : > { %4011 = vmatprep.subr.bf16.mxu0 %v5474_v48  ;;  %v5546_v48 = vld [vmem:[%s6777_s23 + $0x150] ss:$8 sps:$4 sm:$0xff]  }
  0xd9   : > { %3684 = vmatpush1.bf16.msra.mxu1 %v5476_v49  ;;  %v5549_v49 = vld [vmem:[%s6777_s23 + $0x950] ss:$8 sps:$4 sm:$0xff]  }
  0xda   : > { %4012 = vmatpush1.bf16.msra.mxu0 %v5477_v52  ;;  %3685 = vmatprep.subr.bf16.mxu1 %v5478_v53  ;;  %v5557_v52 = vld [vmem:[%s6777_s23 + $0x964] ss:$8 sps:$4 sm:$0xff]   ;;  %v5552_v53 = vld [vmem:[%s6777_s23 + $0x160] ss:$8 sps:$4 sm:$0xff]  }
  0xdb   : > { %4013 = vmatprep.subr.bf16.mxu0 %v5480_v54  ;;  %v5555_v54 = vld [vmem:[%s6777_s23 + $0x960] ss:$8 sps:$4 sm:$0xff]  }
  0xdd   : > { %3686 = vmatpush1.bf16.msra.mxu1 %v5482_v55  ;;  %v5560_v55 = vld [vmem:[%s6777_s23 + $0x174] ss:$8 sps:$4 sm:$0xff]  }
  0xde   : > { %4014 = vmatpush1.bf16.msra.mxu0 %v5483_v56  ;;  %3687 = vmatprep.subr.bf16.mxu1 %v5484_v58  ;;  %v5563_v56 = vld [vmem:[%s6777_s23 + $0x974] ss:$8 sps:$4 sm:$0xff]   ;;  %v5558_v58 = vld [vmem:[%s6777_s23 + $0x170] ss:$8 sps:$4 sm:$0xff]  }
  0xdf   : > { %4015 = vmatprep.subr.bf16.mxu0 %v5486_v59  ;;  %v5561_v59 = vld [vmem:[%s6777_s23 + $0x970] ss:$8 sps:$4 sm:$0xff]  }
  0xe1   : > { %3688 = vmatpush1.bf16.msra.mxu1 %v5488_v61  ;;  %v5566_v61 = vld [vmem:[%s6777_s23 + $0x184] ss:$8 sps:$4 sm:$0xff]  }
  0xe2   : > { %4016 = vmatpush1.bf16.msra.mxu0 %v5489_v63  ;;  %3689 = vmatprep.subr.bf16.mxu1 %v5490_v1  ;;  %v5564_v63 = vld [vmem:[%s6777_s23 + $0x180] ss:$8 sps:$4 sm:$0xff]  }
  0xe3   : > { %4017 = vmatprep.subr.bf16.mxu0 %v5492_v2  ;;  %v5567_v1 = vld [vmem:[%s6777_s23 + $0x980] ss:$8 sps:$4 sm:$0xff]   ;;  %v5572_v2 = vld [vmem:[%s6777_s23 + $0x194] ss:$8 sps:$4 sm:$0xff]  }
  0xe5   : > { %3690 = vmatpush1.bf16.msra.mxu1 %v5494_v7  ;;  %v5581_v7 = vld [vmem:[%s6777_s23 + $0x9a4] ss:$8 sps:$4 sm:$0xff]  }
  0xe6   : > { %4018 = vmatpush1.bf16.msra.mxu0 %v5495_v8  ;;  %3691 = vmatprep.subr.bf16.mxu1 %v5496_v9  ;;  %v5576_v8 = vld [vmem:[%s6777_s23 + $0x1a0] ss:$8 sps:$4 sm:$0xff]  }
  0xe7   : > { %4019 = vmatprep.subr.bf16.mxu0 %v5498_v10  ;;  %v5579_v9 = vld [vmem:[%s6777_s23 + $0x9a0] ss:$8 sps:$4 sm:$0xff]   ;;  %v5584_v10 = vld [vmem:[%s6777_s23 + $0x1b4] ss:$8 sps:$4 sm:$0xff]  }
  0xe9   : > { %3692 = vmatpush1.bf16.msra.mxu1 %v5500_v12  ;;  %v5582_v12 = vld [vmem:[%s6777_s23 + $0x1b0] ss:$8 sps:$4 sm:$0xff]  }
  0xea   : > { %4020 = vmatpush1.bf16.msra.mxu0 %v5501_v13  ;;  %3693 = vmatprep.subr.bf16.mxu1 %v5502_v14  ;;  %v5585_v13 = vld [vmem:[%s6777_s23 + $0x9b0] ss:$8 sps:$4 sm:$0xff]   ;;  %v5590_v14 = vld [vmem:[%s6777_s23 + $0x1c4] ss:$8 sps:$4 sm:$0xff]  }
  0xeb   : > { %4021 = vmatprep.subr.bf16.mxu0 %v5504_v15  ;;  %v5593_v15 = vld [vmem:[%s6777_s23 + $0x9c4] ss:$8 sps:$4 sm:$0xff]  }
  0xed   : > { %3694 = vmatpush1.bf16.msra.mxu1 %v5506_v16  ;;  %v5588_v16 = vld [vmem:[%s6777_s23 + $0x1c0] ss:$8 sps:$4 sm:$0xff]  }
  0xee   : > { %4022 = vmatpush1.bf16.msra.mxu0 %v5507_v17  ;;  %3695 = vmatprep.subr.bf16.mxu1 %v5508_v18  ;;  %v5591_v17 = vld [vmem:[%s6777_s23 + $0x9c0] ss:$8 sps:$4 sm:$0xff]   ;;  %v5596_v18 = vld [vmem:[%s6777_s23 + $0x1d4] ss:$8 sps:$4 sm:$0xff]  }
  0xef   : > { %4023 = vmatprep.subr.bf16.mxu0 %v5510_v19  ;;  %v5599_v19 = vld [vmem:[%s6777_s23 + $0x9d4] ss:$8 sps:$4 sm:$0xff]  }
  0xf1   : > { %3696 = vmatpush1.bf16.msra.mxu1 %v5512_v20  ;;  %v5594_v20 = vld [vmem:[%s6777_s23 + $0x1d0] ss:$8 sps:$4 sm:$0xff]  }
  0xf2   : > { %4024 = vmatpush1.bf16.msra.mxu0 %v5513_v21  ;;  %3706 = vmatprep.subr.bf16.mxu1 %v5517_v22  ;;  %v5597_v21 = vld [vmem:[%s6777_s23 + $0x9d0] ss:$8 sps:$4 sm:$0xff]   ;;  %v5602_v22 = vld [vmem:[%s6777_s23 + $0x1e4] ss:$8 sps:$4 sm:$0xff]  }
  0xf3   : > { %4034 = vmatprep.subr.bf16.mxu0 %v5521_v23  ;;  %v5605_v23 = vld [vmem:[%s6777_s23 + $0x9e4] ss:$8 sps:$4 sm:$0xff]  }
  0xf4   : > { %3698 = vmatmul.mubr.bf16.vlgmr.msra.gmra.mrb[0].mxu1 %v6889_v24 }
  0xf5   : > { %4026 = vmatmul.mubr.bf16.vlgmr.msra.gmra.mrb[0].mxu0 %v6892_v25  ;;  %3707 = vmatpush1.bf16.msra.mxu1 %v5515_v26  ;;  %v877_v26 = vcombine.high %v6857_v60, %v6857_v60  ;;  %v5606_v60 = vld [vmem:[%s6777_s23 + $0x1f0] ss:$8 sps:$4 sm:$0xff]  }
  0xf6   : > { %4035 = vmatpush1.bf16.msra.mxu0 %v5519_v27  ;;  %3708 = vmatprep.subr.bf16.mxu1 %v5524_v28  ;;  %v975_v27 = vcombine.high %v6864_v0, %v6864_v0  ;;  %v5600_v28 = vld [vmem:[%s6777_s23 + $0x1e0] ss:$8 sps:$4 sm:$0xff]   ;;  %v5609_v0 = vld [vmem:[%s6777_s23 + $0x9f0] ss:$8 sps:$4 sm:$0xff]  }
  0xf7   : > { %4036 = vmatprep.subr.bf16.mxu0 %v5527_v29  ;;  %3738 = vmatprep.mubr.bf16.mxu1 %v924_v30  ;;  %v5603_v29 = vld [vmem:[%s6777_s23 + $0x9e0] ss:$8 sps:$4 sm:$0xff]   ;;  %v5608_v30 = vld [vmem:[%s6777_s23 + $0x1f4] ss:$8 sps:$4 sm:$0xff]  }
  0xf8   : > { %4066 = vmatprep.mubr.bf16.mxu0 %v1022_v31  ;;  %v5611_v31 = vld [vmem:[%s6777_s23 + $0x9f4] ss:$8 sps:$4 sm:$0xff]  }
  0xf9   : > { %3709 = vmatpush1.bf16.msra.mxu1 %v5522_v32  ;;  %v6961_v32 = vrot.slane %v877_v26, %v6852_v57  ;;  %v5678_v26 = vld [vmem:[%s6777_s23 + $0x2b0] ss:$8 sps:$4 sm:$0xff]  }
  0xfa   : > { %4037 = vmatpush1.bf16.msra.mxu0 %v5525_v33  ;;  %3710 = vmatprep.subr.bf16.mxu1 %v5530_v34  ;;  %v6964_v33 = vrot.slane %v975_v27, %v6852_v57  ;;  %v5614_v34 = vld [vmem:[%s6777_s23 + $0x204] ss:$8 sps:$4 sm:$0xff]   ;;  %v5681_v27 = vld [vmem:[%s6777_s23 + $0xab0] ss:$8 sps:$4 sm:$0xff]  }
  0xfb   : > { %4038 = vmatprep.subr.bf16.mxu0 %v5533_v35  ;;  %v5617_v35 = vld [vmem:[%s6777_s23 + $0xa04] ss:$8 sps:$4 sm:$0xff]  }
  0xfd   : > { %3711 = vmatpush1.bf16.msra.mxu1 %v5528_v36  ;;  %v893_v36 = vcombine.high %v6961_v32, %v6961_v32 }
  0xfe   : > { %4039 = vmatpush1.bf16.msra.mxu0 %v5531_v37  ;;  %3712 = vmatprep.subr.bf16.mxu1 %v5536_v38  ;;  %v991_v37 = vcombine.high %v6964_v33, %v6964_v33  ;;  %v922_v38 = vcombine.high %v6889_v24, %v6889_v24 }
  0xff   : > { %4040 = vmatprep.subr.bf16.mxu0 %v5539_v39  ;;  %v1020_v39 = vcombine.high %v6892_v25, %v6892_v25  ;;  %v5618_v25 = vld [vmem:[%s6777_s23 + $0x210] ss:$8 sps:$4 sm:$0xff]  }
 0x100   : > { %v6986_v24 = vrot.slane %v991_v37, %v6852_v57  ;;  %v5701_v37 = vld [vmem:[%s6777_s23 + $0xae4] ss:$8 sps:$4 sm:$0xff]  }
 0x101   : > { %3713 = vmatpush1.bf16.msra.mxu1 %v5534_v40  ;;  %v5612_v40 = vld [vmem:[%s6777_s23 + $0x200] ss:$8 sps:$4 sm:$0xff]  }
 0x102   : > { %4041 = vmatpush1.bf16.msra.mxu0 %v5537_v41  ;;  %3714 = vmatprep.subr.bf16.mxu1 %v5542_v42  ;;  %v5615_v41 = vld [vmem:[%s6777_s23 + $0xa00] ss:$8 sps:$4 sm:$0xff]   ;;  %v5620_v42 = vld [vmem:[%s6777_s23 + $0x214] ss:$8 sps:$4 sm:$0xff]  }
 0x103   : > { %4042 = vmatprep.subr.bf16.mxu0 %v5545_v43  ;;  %v5623_v43 = vld [vmem:[%s6777_s23 + $0xa14] ss:$8 sps:$4 sm:$0xff]  }
 0x105   : > { %3715 = vmatpush1.bf16.msra.mxu1 %v5540_v44  ;;  %v6983_v44 = vrot.slane %v893_v36, %v6852_v57  ;;  %v5698_v36 = vld [vmem:[%s6777_s23 + $0x2e4] ss:$8 sps:$4 sm:$0xff]  }
 0x106   : > { %4043 = vmatpush1.bf16.msra.mxu0 %v5543_v45  ;;  %3716 = vmatprep.subr.bf16.mxu1 %v5548_v46  ;;  %v5621_v45 = vld [vmem:[%s6777_s23 + $0xa10] ss:$8 sps:$4 sm:$0xff]   ;;  %v5626_v46 = vld [vmem:[%s6777_s23 + $0x224] ss:$8 sps:$4 sm:$0xff]  }
 0x107   : > { %4044 = vmatprep.subr.bf16.mxu0 %v5551_v47  ;;  %v5629_v47 = vld [vmem:[%s6777_s23 + $0xa24] ss:$8 sps:$4 sm:$0xff]  }
 0x109   : > { %3717 = vmatpush1.bf16.msra.mxu1 %v5546_v48  ;;  %v5624_v48 = vld [vmem:[%s6777_s23 + $0x220] ss:$8 sps:$4 sm:$0xff]  }
 0x10a   : > { %4045 = vmatpush1.bf16.msra.mxu0 %v5549_v49  ;;  %3718 = vmatprep.subr.bf16.mxu1 %v5554_v50  ;;  %v5627_v49 = vld [vmem:[%s6777_s23 + $0xa20] ss:$8 sps:$4 sm:$0xff]   ;;  %v5632_v50 = vld [vmem:[%s6777_s23 + $0x234] ss:$8 sps:$4 sm:$0xff]  }
 0x10b   : > { %4046 = vmatprep.subr.bf16.mxu0 %v5557_v52  ;;  %v5635_v52 = vld [vmem:[%s6777_s23 + $0xa34] ss:$8 sps:$4 sm:$0xff]  }
 0x10d   : > { %3719 = vmatpush1.bf16.msra.mxu1 %v5552_v53  ;;  %v5630_v53 = vld [vmem:[%s6777_s23 + $0x230] ss:$8 sps:$4 sm:$0xff]  }
 0x10e   : > { %4047 = vmatpush1.bf16.msra.mxu0 %v5555_v54  ;;  %3720 = vmatprep.subr.bf16.mxu1 %v5560_v55  ;;  %v5633_v54 = vld [vmem:[%s6777_s23 + $0xa30] ss:$8 sps:$4 sm:$0xff]   ;;  %v5638_v55 = vld [vmem:[%s6777_s23 + $0x244] ss:$8 sps:$4 sm:$0xff]  }
 0x10f   : > { %4048 = vmatprep.subr.bf16.mxu0 %v5563_v56  ;;  %v5641_v56 = vld [vmem:[%s6777_s23 + $0xa44] ss:$8 sps:$4 sm:$0xff]  }
 0x111   : > { %3721 = vmatpush1.bf16.msra.mxu1 %v5558_v58  ;;  %v5636_v58 = vld [vmem:[%s6777_s23 + $0x240] ss:$8 sps:$4 sm:$0xff]  }
 0x112   : > { %4049 = vmatpush1.bf16.msra.mxu0 %v5561_v59  ;;  %3722 = vmatprep.subr.bf16.mxu1 %v5566_v61  ;;  %v5639_v59 = vld [vmem:[%s6777_s23 + $0xa40] ss:$8 sps:$4 sm:$0xff]   ;;  %v5644_v61 = vld [vmem:[%s6777_s23 + $0x254] ss:$8 sps:$4 sm:$0xff]  }
 0x113   : > { %4050 = vmatprep.subr.bf16.mxu0 %v5569_v62  ;;  %v5647_v62 = vld [vmem:[%s6777_s23 + $0xa54] ss:$8 sps:$4 sm:$0xff]  }
 0x115   : > { %3723 = vmatpush1.bf16.msra.mxu1 %v5564_v63  ;;  %v5642_v63 = vld [vmem:[%s6777_s23 + $0x250] ss:$8 sps:$4 sm:$0xff]  }
 0x116   : > { %4051 = vmatpush1.bf16.msra.mxu0 %v5567_v1  ;;  %3724 = vmatprep.subr.bf16.mxu1 %v5572_v2  ;;  %v5645_v1 = vld [vmem:[%s6777_s23 + $0xa50] ss:$8 sps:$4 sm:$0xff]   ;;  %v5650_v2 = vld [vmem:[%s6777_s23 + $0x264] ss:$8 sps:$4 sm:$0xff]  }
 0x117   : > { %4052 = vmatprep.subr.bf16.mxu0 %v5575_v3  ;;  %v5653_v3 = vld [vmem:[%s6777_s23 + $0xa64] ss:$8 sps:$4 sm:$0xff]  }
 0x119   : > { %3725 = vmatpush1.bf16.msra.mxu1 %v5570_v4  ;;  %v5648_v4 = vld [vmem:[%s6777_s23 + $0x260] ss:$8 sps:$4 sm:$0xff]  }
 0x11a   : > { %4053 = vmatpush1.bf16.msra.mxu0 %v5573_v5  ;;  %3726 = vmatprep.subr.bf16.mxu1 %v5578_v6  ;;  %v5651_v5 = vld [vmem:[%s6777_s23 + $0xa60] ss:$8 sps:$4 sm:$0xff]   ;;  %v5656_v6 = vld [vmem:[%s6777_s23 + $0x274] ss:$8 sps:$4 sm:$0xff]  }
 0x11b   : > { %4054 = vmatprep.subr.bf16.mxu0 %v5581_v7  ;;  %v5659_v7 = vld [vmem:[%s6777_s23 + $0xa74] ss:$8 sps:$4 sm:$0xff]  }
 0x11d   : > { %3727 = vmatpush1.bf16.msra.mxu1 %v5576_v8  ;;  %v5654_v8 = vld [vmem:[%s6777_s23 + $0x270] ss:$8 sps:$4 sm:$0xff]  }
 0x11e   : > { %4055 = vmatpush1.bf16.msra.mxu0 %v5579_v9  ;;  %3728 = vmatprep.subr.bf16.mxu1 %v5584_v10  ;;  %v5657_v9 = vld [vmem:[%s6777_s23 + $0xa70] ss:$8 sps:$4 sm:$0xff]   ;;  %v5662_v10 = vld [vmem:[%s6777_s23 + $0x284] ss:$8 sps:$4 sm:$0xff]  }
 0x11f   : > { %4056 = vmatprep.subr.bf16.mxu0 %v5587_v11  ;;  %v5665_v11 = vld [vmem:[%s6777_s23 + $0xa84] ss:$8 sps:$4 sm:$0xff]  }
 0x121   : > { %3729 = vmatpush1.bf16.msra.mxu1 %v5582_v12  ;;  %v5660_v12 = vld [vmem:[%s6777_s23 + $0x280] ss:$8 sps:$4 sm:$0xff]  }
 0x122   : > { %4057 = vmatpush1.bf16.msra.mxu0 %v5585_v13  ;;  %3730 = vmatprep.subr.bf16.mxu1 %v5590_v14  ;;  %v5663_v13 = vld [vmem:[%s6777_s23 + $0xa80] ss:$8 sps:$4 sm:$0xff]   ;;  %v5668_v14 = vld [vmem:[%s6777_s23 + $0x294] ss:$8 sps:$4 sm:$0xff]  }
 0x123   : > { %4058 = vmatprep.subr.bf16.mxu0 %v5593_v15  ;;  %v5671_v15 = vld [vmem:[%s6777_s23 + $0xa94] ss:$8 sps:$4 sm:$0xff]  }
 0x125   : > { %3731 = vmatpush1.bf16.msra.mxu1 %v5588_v16  ;;  %v5666_v16 = vld [vmem:[%s6777_s23 + $0x290] ss:$8 sps:$4 sm:$0xff]  }
 0x126   : > { %4059 = vmatpush1.bf16.msra.mxu0 %v5591_v17  ;;  %3732 = vmatprep.subr.bf16.mxu1 %v5596_v18  ;;  %v5669_v17 = vld [vmem:[%s6777_s23 + $0xa90] ss:$8 sps:$4 sm:$0xff]   ;;  %v5674_v18 = vld [vmem:[%s6777_s23 + $0x2a4] ss:$8 sps:$4 sm:$0xff]  }
 0x127   : > { %4060 = vmatprep.subr.bf16.mxu0 %v5599_v19  ;;  %v5677_v19 = vld [vmem:[%s6777_s23 + $0xaa4] ss:$8 sps:$4 sm:$0xff]  }
 0x129   : > { %3733 = vmatpush1.bf16.msra.mxu1 %v5594_v20  ;;  %v5672_v20 = vld [vmem:[%s6777_s23 + $0x2a0] ss:$8 sps:$4 sm:$0xff]  }
 0x12a   : > { %4061 = vmatpush1.bf16.msra.mxu0 %v5597_v21  ;;  %3734 = vmatprep.subr.bf16.mxu1 %v5602_v22  ;;  %v5675_v21 = vld [vmem:[%s6777_s23 + $0xaa0] ss:$8 sps:$4 sm:$0xff]   ;;  %v5680_v22 = vld [vmem:[%s6777_s23 + $0x2b4] ss:$8 sps:$4 sm:$0xff]  }
 0x12b   : > { %4062 = vmatprep.subr.bf16.mxu0 %v5605_v23  ;;  %v5683_v23 = vld [vmem:[%s6777_s23 + $0xab4] ss:$8 sps:$4 sm:$0xff]  }
 0x12d   : > { %3735 = vmatpush1.bf16.msra.mxu1 %v5600_v28  ;;  %v5686_v28 = vld [vmem:[%s6777_s23 + $0x2c4] ss:$8 sps:$4 sm:$0xff]  }
 0x12e   : > { %4063 = vmatpush1.bf16.msra.mxu0 %v5603_v29  ;;  %3736 = vmatprep.subr.bf16.mxu1 %v5608_v30  ;;  %v5689_v29 = vld [vmem:[%s6777_s23 + $0xac4] ss:$8 sps:$4 sm:$0xff]   ;;  %v5684_v30 = vld [vmem:[%s6777_s23 + $0x2c0] ss:$8 sps:$4 sm:$0xff]  }
 0x12f   : > { %4064 = vmatprep.subr.bf16.mxu0 %v5611_v31  ;;  %v5687_v31 = vld [vmem:[%s6777_s23 + $0xac0] ss:$8 sps:$4 sm:$0xff]  }
 0x131   : > { %3737 = vmatpush1.bf16.msra.mxu1 %v5606_v60  ;;  %v5692_v60 = vld [vmem:[%s6777_s23 + $0x2d4] ss:$8 sps:$4 sm:$0xff]  }
 0x132   : > { %4065 = vmatpush1.bf16.msra.mxu0 %v5609_v0  ;;  %3747 = vmatprep.subr.bf16.mxu1 %v5614_v34  ;;  %v5695_v0 = vld [vmem:[%s6777_s23 + $0xad4] ss:$8 sps:$4 sm:$0xff]   ;;  %v5690_v34 = vld [vmem:[%s6777_s23 + $0x2d0] ss:$8 sps:$4 sm:$0xff]  }
 0x133   : > { %4075 = vmatprep.subr.bf16.mxu0 %v5617_v35  ;;  %v5693_v35 = vld [vmem:[%s6777_s23 + $0xad0] ss:$8 sps:$4 sm:$0xff]  }
 0x134   : > { %3739 = vmatmul.mubr.bf16.vlgmr.msra.gmra.mrb[0].mxu1 %v922_v38  ;;  %v5696_v38 = vld [vmem:[%s6777_s23 + $0x2e0] ss:$8 sps:$4 sm:$0xff]  }
 0x135   : > { %4067 = vmatmul.mubr.bf16.vlgmr.msra.gmra.mrb[0].mxu0 %v1020_v39  ;;  %3748 = vmatpush1.bf16.msra.mxu1 %v5612_v40  ;;  %v5699_v39 = vld [vmem:[%s6777_s23 + $0xae0] ss:$8 sps:$4 sm:$0xff]   ;;  %v5704_v40 = vld [vmem:[%s6777_s23 + $0x2f4] ss:$8 sps:$4 sm:$0xff]  }
 0x136   : > { %4076 = vmatpush1.bf16.msra.mxu0 %v5615_v41  ;;  %3749 = vmatprep.subr.bf16.mxu1 %v5620_v42  ;;  %v5707_v41 = vld [vmem:[%s6777_s23 + $0xaf4] ss:$8 sps:$4 sm:$0xff]   ;;  %v5702_v42 = vld [vmem:[%s6777_s23 + $0x2f0] ss:$8 sps:$4 sm:$0xff]  }
 0x137   : > { %4077 = vmatprep.subr.bf16.mxu0 %v5623_v43  ;;  %3779 = vmatprep.mubr.bf16.mxu1 %v6983_v44  ;;  %v5705_v43 = vld [vmem:[%s6777_s23 + $0xaf0] ss:$8 sps:$4 sm:$0xff]  }
 0x138   : > { %4107 = vmatprep.mubr.bf16.mxu0 %v6986_v24 }
 0x139   : > { %3750 = vmatpush1.bf16.msra.mxu1 %v5618_v25  ;;  %v5710_v25 = vld [vmem:[%s6777_s23 + $0x304] ss:$8 sps:$4 sm:$0xff]  }
 0x13a   : > { %4078 = vmatpush1.bf16.msra.mxu0 %v5621_v45  ;;  %3751 = vmatprep.subr.bf16.mxu1 %v5626_v46  ;;  %v5713_v45 = vld [vmem:[%s6777_s23 + $0xb04] ss:$8 sps:$4 sm:$0xff]   ;;  %v7052_v46 = vrot.slane %v6961_v32, %v6852_v57  ;;  %v925_v32 = vcombine.high %v6983_v44, %v6983_v44 }
 0x13b   : > { %4079 = vmatprep.subr.bf16.mxu0 %v5629_v47  ;;  %v7056_v47 = vrot.slane %v6964_v33, %v6852_v57  ;;  %v5714_v33 = vld [vmem:[%s6777_s23 + $0x310] ss:$8 sps:$4 sm:$0xff]   ;;  %v5722_v44 = vld [vmem:[%s6777_s23 + $0x324] ss:$8 sps:$4 sm:$0xff]  }
 0x13d   : > { %3752 = vmatpush1.bf16.msra.mxu1 %v5624_v48  ;;  %v5708_v48 = vld [vmem:[%s6777_s23 + $0x300] ss:$8 sps:$4 sm:$0xff]  }
 0x13e   : > { %4080 = vmatpush1.bf16.msra.mxu0 %v5627_v49  ;;  %3753 = vmatprep.subr.bf16.mxu1 %v5632_v50  ;;  %v5711_v49 = vld [vmem:[%s6777_s23 + $0xb00] ss:$8 sps:$4 sm:$0xff]   ;;  %v5716_v50 = vld [vmem:[%s6777_s23 + $0x314] ss:$8 sps:$4 sm:$0xff]  }
 0x13f   : > { %4081 = vmatprep.subr.bf16.mxu0 %v5635_v52  ;;  %v5719_v52 = vld [vmem:[%s6777_s23 + $0xb14] ss:$8 sps:$4 sm:$0xff]  }
 0x141   : > { %3754 = vmatpush1.bf16.msra.mxu1 %v5630_v53  ;;  %v1023_v53 = vcombine.high %v6986_v24, %v6986_v24  ;;  %v5720_v24 = vld [vmem:[%s6777_s23 + $0x320] ss:$8 sps:$4 sm:$0xff]  }
 0x142   : > { %4082 = vmatpush1.bf16.msra.mxu0 %v5633_v54  ;;  %3755 = vmatprep.subr.bf16.mxu1 %v5638_v55  ;;  %v5717_v54 = vld [vmem:[%s6777_s23 + $0xb10] ss:$8 sps:$4 sm:$0xff]   ;;  %v5725_v55 = vld [vmem:[%s6777_s23 + $0xb24] ss:$8 sps:$4 sm:$0xff]  }
 0x143   : > { %4083 = vmatprep.subr.bf16.mxu0 %v5641_v56  ;;  %v5723_v56 = vld [vmem:[%s6777_s23 + $0xb20] ss:$8 sps:$4 sm:$0xff]  }
 0x145   : > { %3756 = vmatpush1.bf16.msra.mxu1 %v5636_v58  ;;  %v5728_v58 = vld [vmem:[%s6777_s23 + $0x334] ss:$8 sps:$4 sm:$0xff]  }
 0x146   : > { %4084 = vmatpush1.bf16.msra.mxu0 %v5639_v59  ;;  %3757 = vmatprep.subr.bf16.mxu1 %v5644_v61  ;;  %v5731_v59 = vld [vmem:[%s6777_s23 + $0xb34] ss:$8 sps:$4 sm:$0xff]   ;;  %v5726_v61 = vld [vmem:[%s6777_s23 + $0x330] ss:$8 sps:$4 sm:$0xff]  }
 0x147   : > { %4085 = vmatprep.subr.bf16.mxu0 %v5647_v62  ;;  %v5729_v62 = vld [vmem:[%s6777_s23 + $0xb30] ss:$8 sps:$4 sm:$0xff]  }
 0x149   : > { %3758 = vmatpush1.bf16.msra.mxu1 %v5642_v63  ;;  %v5734_v63 = vld [vmem:[%s6777_s23 + $0x344] ss:$8 sps:$4 sm:$0xff]  }
 0x14a   : > { %4086 = vmatpush1.bf16.msra.mxu0 %v5645_v1  ;;  %3759 = vmatprep.subr.bf16.mxu1 %v5650_v2  ;;  %v5737_v1 = vld [vmem:[%s6777_s23 + $0xb44] ss:$8 sps:$4 sm:$0xff]   ;;  %v5732_v2 = vld [vmem:[%s6777_s23 + $0x340] ss:$8 sps:$4 sm:$0xff]  }
 0x14b   : > { %4087 = vmatprep.subr.bf16.mxu0 %v5653_v3  ;;  %v5735_v3 = vld [vmem:[%s6777_s23 + $0xb40] ss:$8 sps:$4 sm:$0xff]  }
 0x14d   : > { %3760 = vmatpush1.bf16.msra.mxu1 %v5648_v4  ;;  %v5740_v4 = vld [vmem:[%s6777_s23 + $0x354] ss:$8 sps:$4 sm:$0xff]  }
 0x14e   : > { %4088 = vmatpush1.bf16.msra.mxu0 %v5651_v5  ;;  %3761 = vmatprep.subr.bf16.mxu1 %v5656_v6  ;;  %v5743_v5 = vld [vmem:[%s6777_s23 + $0xb54] ss:$8 sps:$4 sm:$0xff]   ;;  %v5738_v6 = vld [vmem:[%s6777_s23 + $0x350] ss:$8 sps:$4 sm:$0xff]  }
 0x14f   : > { %4089 = vmatprep.subr.bf16.mxu0 %v5659_v7  ;;  %v5741_v7 = vld [vmem:[%s6777_s23 + $0xb50] ss:$8 sps:$4 sm:$0xff]  }
 0x151   : > { %3762 = vmatpush1.bf16.msra.mxu1 %v5654_v8  ;;  %v5746_v8 = vld [vmem:[%s6777_s23 + $0x364] ss:$8 sps:$4 sm:$0xff]  }
 0x152   : > { %4090 = vmatpush1.bf16.msra.mxu0 %v5657_v9  ;;  %3763 = vmatprep.subr.bf16.mxu1 %v5662_v10  ;;  %v5749_v9 = vld [vmem:[%s6777_s23 + $0xb64] ss:$8 sps:$4 sm:$0xff]   ;;  %v5744_v10 = vld [vmem:[%s6777_s23 + $0x360] ss:$8 sps:$4 sm:$0xff]  }
 0x153   : > { %4091 = vmatprep.subr.bf16.mxu0 %v5665_v11  ;;  %v5747_v11 = vld [vmem:[%s6777_s23 + $0xb60] ss:$8 sps:$4 sm:$0xff]  }
 0x155   : > { %3764 = vmatpush1.bf16.msra.mxu1 %v5660_v12  ;;  %v5752_v12 = vld [vmem:[%s6777_s23 + $0x374] ss:$8 sps:$4 sm:$0xff]  }
 0x156   : > { %4092 = vmatpush1.bf16.msra.mxu0 %v5663_v13  ;;  %3765 = vmatprep.subr.bf16.mxu1 %v5668_v14  ;;  %v5755_v13 = vld [vmem:[%s6777_s23 + $0xb74] ss:$8 sps:$4 sm:$0xff]   ;;  %v5750_v14 = vld [vmem:[%s6777_s23 + $0x370] ss:$8 sps:$4 sm:$0xff]  }
 0x157   : > { %4093 = vmatprep.subr.bf16.mxu0 %v5671_v15  ;;  %v5753_v15 = vld [vmem:[%s6777_s23 + $0xb70] ss:$8 sps:$4 sm:$0xff]  }
 0x159   : > { %3766 = vmatpush1.bf16.msra.mxu1 %v5666_v16  ;;  %v5758_v16 = vld [vmem:[%s6777_s23 + $0x384] ss:$8 sps:$4 sm:$0xff]  }
 0x15a   : > { %4094 = vmatpush1.bf16.msra.mxu0 %v5669_v17  ;;  %3767 = vmatprep.subr.bf16.mxu1 %v5674_v18  ;;  %v5761_v17 = vld [vmem:[%s6777_s23 + $0xb84] ss:$8 sps:$4 sm:$0xff]   ;;  %v5756_v18 = vld [vmem:[%s6777_s23 + $0x380] ss:$8 sps:$4 sm:$0xff]  }
 0x15b   : > { %4095 = vmatprep.subr.bf16.mxu0 %v5677_v19  ;;  %v5759_v19 = vld [vmem:[%s6777_s23 + $0xb80] ss:$8 sps:$4 sm:$0xff]  }
 0x15d   : > { %3768 = vmatpush1.bf16.msra.mxu1 %v5672_v20  ;;  %v5764_v20 = vld [vmem:[%s6777_s23 + $0x394] ss:$8 sps:$4 sm:$0xff]  }
 0x15e   : > { %4096 = vmatpush1.bf16.msra.mxu0 %v5675_v21  ;;  %3769 = vmatprep.subr.bf16.mxu1 %v5680_v22  ;;  %v5767_v21 = vld [vmem:[%s6777_s23 + $0xb94] ss:$8 sps:$4 sm:$0xff]   ;;  %v5762_v22 = vld [vmem:[%s6777_s23 + $0x390] ss:$8 sps:$4 sm:$0xff]  }
 0x15f   : > { %4097 = vmatprep.subr.bf16.mxu0 %v5683_v23  ;;  %v5765_v23 = vld [vmem:[%s6777_s23 + $0xb90] ss:$8 sps:$4 sm:$0xff]  }
 0x161   : > { %3770 = vmatpush1.bf16.msra.mxu1 %v5678_v26  ;;  %v5770_v26 = vld [vmem:[%s6777_s23 + $0x3a4] ss:$8 sps:$4 sm:$0xff]  }
 0x162   : > { %4098 = vmatpush1.bf16.msra.mxu0 %v5681_v27  ;;  %3771 = vmatprep.subr.bf16.mxu1 %v5686_v28  ;;  %v5773_v27 = vld [vmem:[%s6777_s23 + $0xba4] ss:$8 sps:$4 sm:$0xff]   ;;  %v5768_v28 = vld [vmem:[%s6777_s23 + $0x3a0] ss:$8 sps:$4 sm:$0xff]  }
 0x163   : > { %4099 = vmatprep.subr.bf16.mxu0 %v5689_v29  ;;  %v5771_v29 = vld [vmem:[%s6777_s23 + $0xba0] ss:$8 sps:$4 sm:$0xff]  }
 0x165   : > { %3772 = vmatpush1.bf16.msra.mxu1 %v5684_v30  ;;  %v5776_v30 = vld [vmem:[%s6777_s23 + $0x3b4] ss:$8 sps:$4 sm:$0xff]  }
 0x166   : > { %4100 = vmatpush1.bf16.msra.mxu0 %v5687_v31  ;;  %3773 = vmatprep.subr.bf16.mxu1 %v5692_v60  ;;  %v5779_v31 = vld [vmem:[%s6777_s23 + $0xbb4] ss:$8 sps:$4 sm:$0xff]   ;;  %v5774_v60 = vld [vmem:[%s6777_s23 + $0x3b0] ss:$8 sps:$4 sm:$0xff]  }
 0x167   : > { %4101 = vmatprep.subr.bf16.mxu0 %v5695_v0  ;;  %v5777_v0 = vld [vmem:[%s6777_s23 + $0xbb0] ss:$8 sps:$4 sm:$0xff]  }
 0x169   : > { %3774 = vmatpush1.bf16.msra.mxu1 %v5690_v34  ;;  %v5782_v34 = vld [vmem:[%s6777_s23 + $0x3c4] ss:$8 sps:$4 sm:$0xff]  }
 0x16a   : > { %4102 = vmatpush1.bf16.msra.mxu0 %v5693_v35  ;;  %3775 = vmatprep.subr.bf16.mxu1 %v5698_v36  ;;  %v5785_v35 = vld [vmem:[%s6777_s23 + $0xbc4] ss:$8 sps:$4 sm:$0xff]   ;;  %v5780_v36 = vld [vmem:[%s6777_s23 + $0x3c0] ss:$8 sps:$4 sm:$0xff]  }
 0x16b   : > { %4103 = vmatprep.subr.bf16.mxu0 %v5701_v37  ;;  %v5783_v37 = vld [vmem:[%s6777_s23 + $0xbc0] ss:$8 sps:$4 sm:$0xff]  }
 0x16d   : > { %3776 = vmatpush1.bf16.msra.mxu1 %v5696_v38  ;;  %v5788_v38 = vld [vmem:[%s6777_s23 + $0x3d4] ss:$8 sps:$4 sm:$0xff]  }
 0x16e   : > { %4104 = vmatpush1.bf16.msra.mxu0 %v5699_v39  ;;  %3777 = vmatprep.subr.bf16.mxu1 %v5704_v40  ;;  %v5791_v39 = vld [vmem:[%s6777_s23 + $0xbd4] ss:$8 sps:$4 sm:$0xff]   ;;  %v5786_v40 = vld [vmem:[%s6777_s23 + $0x3d0] ss:$8 sps:$4 sm:$0xff]  }
 0x16f   : > { %4105 = vmatprep.subr.bf16.mxu0 %v5707_v41  ;;  %v5789_v41 = vld [vmem:[%s6777_s23 + $0xbd0] ss:$8 sps:$4 sm:$0xff]  }
 0x171   : > { %3778 = vmatpush1.bf16.msra.mxu1 %v5702_v42  ;;  %v5794_v42 = vld [vmem:[%s6777_s23 + $0x3e4] ss:$8 sps:$4 sm:$0xff]  }
 0x172   : > { %4106 = vmatpush1.bf16.msra.mxu0 %v5705_v43  ;;  %3788 = vmatprep.subr.bf16.mxu1 %v5710_v25  ;;  %v5797_v43 = vld [vmem:[%s6777_s23 + $0xbe4] ss:$8 sps:$4 sm:$0xff]   ;;  %v5792_v25 = vld [vmem:[%s6777_s23 + $0x3e0] ss:$8 sps:$4 sm:$0xff]  }
 0x173   : > { %4116 = vmatprep.subr.bf16.mxu0 %v5713_v45  ;;  %v5795_v45 = vld [vmem:[%s6777_s23 + $0xbe0] ss:$8 sps:$4 sm:$0xff]  }
 0x174   : > { %3780 = vmatmul.mubr.bf16.vlgmr.msra.gmra.mrb[0].mxu1 %v7052_v46 }
 0x175   : > { %4108 = vmatmul.mubr.bf16.vlgmr.msra.gmra.mrb[0].mxu0 %v7056_v47  ;;  %3789 = vmatpush1.bf16.msra.mxu1 %v5708_v48  ;;  %v7123_v48 = vld [vmem:[%s6769_s24 + $0x8] sm:$0xff] }
 0x176   : > { %4117 = vmatpush1.bf16.msra.mxu0 %v5711_v49  ;;  %3790 = vmatprep.subr.bf16.mxu1 %v5716_v50  ;;  %v7126_v49 = vld [vmem:[%s6769_s24 + $0x18] sm:$0xff] }
 0x177   : > { %4118 = vmatprep.subr.bf16.mxu0 %v5719_v52  ;;  %3820 = vmatprep.mubr.bf16.mxu1 %v925_v32  ;;  %v5800_v50 = vld [vmem:[%s6777_s23 + $0x3f4] ss:$8 sps:$4 sm:$0xff]   ;;  %v7132_v32 = vrot.slane %v7123_v48, %v6852_v57 }
 0x178   : > { %4148 = vmatprep.mubr.bf16.mxu0 %v1023_v53  ;;  %v5803_v52 = vld [vmem:[%s6777_s23 + $0xbf4] ss:$8 sps:$4 sm:$0xff]   ;;  %v7136_v53 = vrot.slane %v7126_v49, %v6852_v57 }
 0x179   : > { %3791 = vmatpush1.bf16.msra.mxu1 %v5714_v33  ;;  %v5798_v33 = vld [vmem:[%s6777_s23 + $0x3f0] ss:$8 sps:$4 sm:$0xff]  }
 0x17a   : > { %4119 = vmatpush1.bf16.msra.mxu0 %v5717_v54  ;;  %3792 = vmatprep.subr.bf16.mxu1 %v5722_v44  ;;  %v5801_v54 = vld [vmem:[%s6777_s23 + $0xbf0] ss:$8 sps:$4 sm:$0xff]   ;;  %v5806_v44 = vld [vmem:[%s6777_s23 + $0x404] ss:$8 sps:$4 sm:$0xff]  }
 0x17b   : > { %4120 = vmatprep.subr.bf16.mxu0 %v5725_v55  ;;  %v5809_v55 = vld [vmem:[%s6777_s23 + $0xc04] ss:$8 sps:$4 sm:$0xff]  }
 0x17d   : > { %3793 = vmatpush1.bf16.msra.mxu1 %v5720_v24  ;;  %v941_v24 = vcombine.high %v7132_v32, %v7132_v32 }
 0x17e   : > { %4121 = vmatpush1.bf16.msra.mxu0 %v5723_v56  ;;  %3794 = vmatprep.subr.bf16.mxu1 %v5728_v58  ;;  %v1039_v56 = vcombine.high %v7136_v53, %v7136_v53  ;;  %v5804_v58 = vld [vmem:[%s6777_s23 + $0x400] ss:$8 sps:$4 sm:$0xff]  }
 0x17f   : > { %4122 = vmatprep.subr.bf16.mxu0 %v5731_v59  ;;  %v5807_v59 = vld [vmem:[%s6777_s23 + $0xc00] ss:$8 sps:$4 sm:$0xff]  }
 0x181   : > { %3795 = vmatpush1.bf16.msra.mxu1 %v5726_v61  ;;  %v923_v61 = vcombine.high %v7052_v46, %v7052_v46  ;;  %v5810_v46 = vld [vmem:[%s6777_s23 + $0x410] ss:$8 sps:$4 sm:$0xff]  }
 0x182   : > { %4123 = vmatpush1.bf16.msra.mxu0 %v5729_v62  ;;  %3796 = vmatprep.subr.bf16.mxu1 %v5734_v63  ;;  %v1021_v62 = vcombine.high %v7056_v47, %v7056_v47  ;;  %v5812_v63 = vld [vmem:[%s6777_s23 + $0x414] ss:$8 sps:$4 sm:$0xff]   ;;  %v5813_v47 = vld [vmem:[%s6777_s23 + $0xc10] ss:$8 sps:$4 sm:$0xff]  }
 0x183   : > { %4124 = vmatprep.subr.bf16.mxu0 %v5737_v1  ;;  %v5815_v1 = vld [vmem:[%s6777_s23 + $0xc14] ss:$8 sps:$4 sm:$0xff]  }
 0x185   : > { %3797 = vmatpush1.bf16.msra.mxu1 %v5732_v2  ;;  %v7155_v2 = vrot.slane %v941_v24, %v6852_v57  ;;  %v5882_v24 = vld [vmem:[%s6777_s23 + $0x4d0] ss:$8 sps:$4 sm:$0xff]  }
 0x186   : > { %4125 = vmatpush1.bf16.msra.mxu0 %v5735_v3  ;;  %3798 = vmatprep.subr.bf16.mxu1 %v5740_v4  ;;  %v7158_v3 = vrot.slane %v1039_v56, %v6852_v57  ;;  %v5818_v4 = vld [vmem:[%s6777_s23 + $0x424] ss:$8 sps:$4 sm:$0xff]   ;;  %v5885_v56 = vld [vmem:[%s6777_s23 + $0xcd0] ss:$8 sps:$4 sm:$0xff]  }
 0x187   : > { %4126 = vmatprep.subr.bf16.mxu0 %v5743_v5  ;;  %v5821_v5 = vld [vmem:[%s6777_s23 + $0xc24] ss:$8 sps:$4 sm:$0xff]  }
 0x189   : > { %3799 = vmatpush1.bf16.msra.mxu1 %v5738_v6  ;;  %v5816_v6 = vld [vmem:[%s6777_s23 + $0x420] ss:$8 sps:$4 sm:$0xff]  }
 0x18a   : > { %4127 = vmatpush1.bf16.msra.mxu0 %v5741_v7  ;;  %3800 = vmatprep.subr.bf16.mxu1 %v5746_v8  ;;  %v5819_v7 = vld [vmem:[%s6777_s23 + $0xc20] ss:$8 sps:$4 sm:$0xff]   ;;  %v5824_v8 = vld [vmem:[%s6777_s23 + $0x434] ss:$8 sps:$4 sm:$0xff]  }
 0x18b   : > { %4128 = vmatprep.subr.bf16.mxu0 %v5749_v9  ;;  %v5827_v9 = vld [vmem:[%s6777_s23 + $0xc34] ss:$8 sps:$4 sm:$0xff]  }
 0x18d   : > { %3801 = vmatpush1.bf16.msra.mxu1 %v5744_v10  ;;  %v5822_v10 = vld [vmem:[%s6777_s23 + $0x430] ss:$8 sps:$4 sm:$0xff]  }
 0x18e   : > { %4129 = vmatpush1.bf16.msra.mxu0 %v5747_v11  ;;  %3802 = vmatprep.subr.bf16.mxu1 %v5752_v12  ;;  %v5825_v11 = vld [vmem:[%s6777_s23 + $0xc30] ss:$8 sps:$4 sm:$0xff]   ;;  %v5830_v12 = vld [vmem:[%s6777_s23 + $0x444] ss:$8 sps:$4 sm:$0xff]  }
 0x18f   : > { %4130 = vmatprep.subr.bf16.mxu0 %v5755_v13  ;;  %v5833_v13 = vld [vmem:[%s6777_s23 + $0xc44] ss:$8 sps:$4 sm:$0xff]  }
 0x191   : > { %3803 = vmatpush1.bf16.msra.mxu1 %v5750_v14  ;;  %v5828_v14 = vld [vmem:[%s6777_s23 + $0x440] ss:$8 sps:$4 sm:$0xff]  }
 0x192   : > { %4131 = vmatpush1.bf16.msra.mxu0 %v5753_v15  ;;  %3804 = vmatprep.subr.bf16.mxu1 %v5758_v16  ;;  %v5831_v15 = vld [vmem:[%s6777_s23 + $0xc40] ss:$8 sps:$4 sm:$0xff]   ;;  %v5836_v16 = vld [vmem:[%s6777_s23 + $0x454] ss:$8 sps:$4 sm:$0xff]  }
 0x193   : > { %4132 = vmatprep.subr.bf16.mxu0 %v5761_v17  ;;  %v5839_v17 = vld [vmem:[%s6777_s23 + $0xc54] ss:$8 sps:$4 sm:$0xff]  }
 0x195   : > { %3805 = vmatpush1.bf16.msra.mxu1 %v5756_v18  ;;  %v5834_v18 = vld [vmem:[%s6777_s23 + $0x450] ss:$8 sps:$4 sm:$0xff]  }
 0x196   : > { %4133 = vmatpush1.bf16.msra.mxu0 %v5759_v19  ;;  %3806 = vmatprep.subr.bf16.mxu1 %v5764_v20  ;;  %v5837_v19 = vld [vmem:[%s6777_s23 + $0xc50] ss:$8 sps:$4 sm:$0xff]   ;;  %v5842_v20 = vld [vmem:[%s6777_s23 + $0x464] ss:$8 sps:$4 sm:$0xff]  }
 0x197   : > { %4134 = vmatprep.subr.bf16.mxu0 %v5767_v21  ;;  %v5845_v21 = vld [vmem:[%s6777_s23 + $0xc64] ss:$8 sps:$4 sm:$0xff]  }
 0x199   : > { %3807 = vmatpush1.bf16.msra.mxu1 %v5762_v22  ;;  %v5840_v22 = vld [vmem:[%s6777_s23 + $0x460] ss:$8 sps:$4 sm:$0xff]  }
 0x19a   : > { %4135 = vmatpush1.bf16.msra.mxu0 %v5765_v23  ;;  %3808 = vmatprep.subr.bf16.mxu1 %v5770_v26  ;;  %v5843_v23 = vld [vmem:[%s6777_s23 + $0xc60] ss:$8 sps:$4 sm:$0xff]   ;;  %v5848_v26 = vld [vmem:[%s6777_s23 + $0x474] ss:$8 sps:$4 sm:$0xff]  }
 0x19b   : > { %4136 = vmatprep.subr.bf16.mxu0 %v5773_v27  ;;  %v5851_v27 = vld [vmem:[%s6777_s23 + $0xc74] ss:$8 sps:$4 sm:$0xff]  }
 0x19d   : > { %3809 = vmatpush1.bf16.msra.mxu1 %v5768_v28  ;;  %v5846_v28 = vld [vmem:[%s6777_s23 + $0x470] ss:$8 sps:$4 sm:$0xff]  }
 0x19e   : > { %4137 = vmatpush1.bf16.msra.mxu0 %v5771_v29  ;;  %3810 = vmatprep.subr.bf16.mxu1 %v5776_v30  ;;  %v5849_v29 = vld [vmem:[%s6777_s23 + $0xc70] ss:$8 sps:$4 sm:$0xff]   ;;  %v5854_v30 = vld [vmem:[%s6777_s23 + $0x484] ss:$8 sps:$4 sm:$0xff]  }
 0x19f   : > { %4138 = vmatprep.subr.bf16.mxu0 %v5779_v31  ;;  %v5857_v31 = vld [vmem:[%s6777_s23 + $0xc84] ss:$8 sps:$4 sm:$0xff]  }
 0x1a1   : > { %3811 = vmatpush1.bf16.msra.mxu1 %v5774_v60  ;;  %v5852_v60 = vld [vmem:[%s6777_s23 + $0x480] ss:$8 sps:$4 sm:$0xff]  }
 0x1a2   : > { %4139 = vmatpush1.bf16.msra.mxu0 %v5777_v0  ;;  %3812 = vmatprep.subr.bf16.mxu1 %v5782_v34  ;;  %v5855_v0 = vld [vmem:[%s6777_s23 + $0xc80] ss:$8 sps:$4 sm:$0xff]   ;;  %v5860_v34 = vld [vmem:[%s6777_s23 + $0x494] ss:$8 sps:$4 sm:$0xff]  }
 0x1a3   : > { %4140 = vmatprep.subr.bf16.mxu0 %v5785_v35  ;;  %v5863_v35 = vld [vmem:[%s6777_s23 + $0xc94] ss:$8 sps:$4 sm:$0xff]  }
 0x1a5   : > { %3813 = vmatpush1.bf16.msra.mxu1 %v5780_v36  ;;  %v5858_v36 = vld [vmem:[%s6777_s23 + $0x490] ss:$8 sps:$4 sm:$0xff]  }
 0x1a6   : > { %4141 = vmatpush1.bf16.msra.mxu0 %v5783_v37  ;;  %3814 = vmatprep.subr.bf16.mxu1 %v5788_v38  ;;  %v5861_v37 = vld [vmem:[%s6777_s23 + $0xc90] ss:$8 sps:$4 sm:$0xff]   ;;  %v5866_v38 = vld [vmem:[%s6777_s23 + $0x4a4] ss:$8 sps:$4 sm:$0xff]  }
 0x1a7   : > { %4142 = vmatprep.subr.bf16.mxu0 %v5791_v39  ;;  %v5869_v39 = vld [vmem:[%s6777_s23 + $0xca4] ss:$8 sps:$4 sm:$0xff]  }
 0x1a9   : > { %3815 = vmatpush1.bf16.msra.mxu1 %v5786_v40  ;;  %v5864_v40 = vld [vmem:[%s6777_s23 + $0x4a0] ss:$8 sps:$4 sm:$0xff]  }
 0x1aa   : > { %4143 = vmatpush1.bf16.msra.mxu0 %v5789_v41  ;;  %3816 = vmatprep.subr.bf16.mxu1 %v5794_v42  ;;  %v5867_v41 = vld [vmem:[%s6777_s23 + $0xca0] ss:$8 sps:$4 sm:$0xff]   ;;  %v5872_v42 = vld [vmem:[%s6777_s23 + $0x4b4] ss:$8 sps:$4 sm:$0xff]  }
 0x1ab   : > { %4144 = vmatprep.subr.bf16.mxu0 %v5797_v43  ;;  %v5875_v43 = vld [vmem:[%s6777_s23 + $0xcb4] ss:$8 sps:$4 sm:$0xff]  }
 0x1ad   : > { %3817 = vmatpush1.bf16.msra.mxu1 %v5792_v25  ;;  %v5870_v25 = vld [vmem:[%s6777_s23 + $0x4b0] ss:$8 sps:$4 sm:$0xff]  }
 0x1ae   : > { %4145 = vmatpush1.bf16.msra.mxu0 %v5795_v45  ;;  %3818 = vmatprep.subr.bf16.mxu1 %v5800_v50  ;;  %v5873_v45 = vld [vmem:[%s6777_s23 + $0xcb0] ss:$8 sps:$4 sm:$0xff]   ;;  %v5878_v50 = vld [vmem:[%s6777_s23 + $0x4c4] ss:$8 sps:$4 sm:$0xff]  }
 0x1af   : > { %4146 = vmatprep.subr.bf16.mxu0 %v5803_v52  ;;  %v5881_v52 = vld [vmem:[%s6777_s23 + $0xcc4] ss:$8 sps:$4 sm:$0xff]  }
 0x1b1   : > { %3819 = vmatpush1.bf16.msra.mxu1 %v5798_v33  ;;  %v5876_v33 = vld [vmem:[%s6777_s23 + $0x4c0] ss:$8 sps:$4 sm:$0xff]  }
 0x1b2   : > { %4147 = vmatpush1.bf16.msra.mxu0 %v5801_v54  ;;  %3829 = vmatprep.subr.bf16.mxu1 %v5806_v44  ;;  %v5879_v54 = vld [vmem:[%s6777_s23 + $0xcc0] ss:$8 sps:$4 sm:$0xff]   ;;  %v5884_v44 = vld [vmem:[%s6777_s23 + $0x4d4] ss:$8 sps:$4 sm:$0xff]  }
 0x1b3   : > { %4157 = vmatprep.subr.bf16.mxu0 %v5809_v55  ;;  %v5887_v55 = vld [vmem:[%s6777_s23 + $0xcd4] ss:$8 sps:$4 sm:$0xff]  }
 0x1b4   : > { %3821 = vmatmul.mubr.bf16.vlgmr.msra.gmra.mrb[0].mxu1 %v923_v61  ;;  %v5888_v61 = vld [vmem:[%s6777_s23 + $0x4e0] ss:$8 sps:$4 sm:$0xff]  }
 0x1b5   : > { %4149 = vmatmul.mubr.bf16.vlgmr.msra.gmra.mrb[0].mxu0 %v1021_v62  ;;  %3830 = vmatpush1.bf16.msra.mxu1 %v5804_v58  ;;  %v5890_v58 = vld [vmem:[%s6777_s23 + $0x4e4] ss:$8 sps:$4 sm:$0xff]   ;;  %v5891_v62 = vld [vmem:[%s6777_s23 + $0xce0] ss:$8 sps:$4 sm:$0xff]  }
 0x1b6   : > { %4158 = vmatpush1.bf16.msra.mxu0 %v5807_v59  ;;  %3831 = vmatprep.subr.bf16.mxu1 %v5812_v63  ;;  %v5893_v59 = vld [vmem:[%s6777_s23 + $0xce4] ss:$8 sps:$4 sm:$0xff]   ;;  %v5896_v63 = vld [vmem:[%s6777_s23 + $0x4f4] ss:$8 sps:$4 sm:$0xff]  }
 0x1b7   : > { %4159 = vmatprep.subr.bf16.mxu0 %v5815_v1  ;;  %3861 = vmatprep.mubr.bf16.mxu1 %v7155_v2  ;;  %v5899_v1 = vld [vmem:[%s6777_s23 + $0xcf4] ss:$8 sps:$4 sm:$0xff]  }
 0x1b8   : > { %4189 = vmatprep.mubr.bf16.mxu0 %v7158_v3 }
 0x1b9   : > { %3832 = vmatpush1.bf16.msra.mxu1 %v5810_v46  ;;  %v5894_v46 = vld [vmem:[%s6777_s23 + $0x4f0] ss:$8 sps:$4 sm:$0xff]  }
 0x1ba   : > { %4160 = vmatpush1.bf16.msra.mxu0 %v5813_v47  ;;  %3833 = vmatprep.subr.bf16.mxu1 %v5818_v4  ;;  %v5897_v47 = vld [vmem:[%s6777_s23 + $0xcf0] ss:$8 sps:$4 sm:$0xff]   ;;  %v5902_v4 = vld [vmem:[%s6777_s23 + $0x504] ss:$8 sps:$4 sm:$0xff]  }
 0x1bb   : > { %4161 = vmatprep.subr.bf16.mxu0 %v5821_v5  ;;  %v5905_v5 = vld [vmem:[%s6777_s23 + $0xd04] ss:$8 sps:$4 sm:$0xff]  }
 0x1bd   : > { %3834 = vmatpush1.bf16.msra.mxu1 %v5816_v6  ;;  %v7224_v6 = vrot.slane %v7132_v32, %v6852_v57  ;;  %v973_v32 = vcombine.high %v7155_v2, %v7155_v2  ;;  %v5914_v2 = vld [vmem:[%s6777_s23 + $0x524] ss:$8 sps:$4 sm:$0xff]  }
 0x1be   : > { %4162 = vmatpush1.bf16.msra.mxu0 %v5819_v7  ;;  %3835 = vmatprep.subr.bf16.mxu1 %v5824_v8  ;;  %v7228_v7 = vrot.slane %v7136_v53, %v6852_v57  ;;  %v5900_v8 = vld [vmem:[%s6777_s23 + $0x500] ss:$8 sps:$4 sm:$0xff]   ;;  %v5906_v53 = vld [vmem:[%s6777_s23 + $0x510] ss:$8 sps:$4 sm:$0xff]  }
 0x1bf   : > { %4163 = vmatprep.subr.bf16.mxu0 %v5827_v9  ;;  %v5903_v9 = vld [vmem:[%s6777_s23 + $0xd00] ss:$8 sps:$4 sm:$0xff]  }
 0x1c1   : > { %3836 = vmatpush1.bf16.msra.mxu1 %v5822_v10  ;;  %v5908_v10 = vld [vmem:[%s6777_s23 + $0x514] ss:$8 sps:$4 sm:$0xff]  }
 0x1c2   : > { %4164 = vmatpush1.bf16.msra.mxu0 %v5825_v11  ;;  %3837 = vmatprep.subr.bf16.mxu1 %v5830_v12  ;;  %v5911_v11 = vld [vmem:[%s6777_s23 + $0xd14] ss:$8 sps:$4 sm:$0xff]   ;;  %v1071_v12 = vcombine.high %v7158_v3, %v7158_v3  ;;  %v5912_v3 = vld [vmem:[%s6777_s23 + $0x520] ss:$8 sps:$4 sm:$0xff]  }
 0x1c3   : > { %4165 = vmatprep.subr.bf16.mxu0 %v5833_v13  ;;  %v5909_v13 = vld [vmem:[%s6777_s23 + $0xd10] ss:$8 sps:$4 sm:$0xff]  }
 0x1c5   : > { %3838 = vmatpush1.bf16.msra.mxu1 %v5828_v14  ;;  %v5917_v14 = vld [vmem:[%s6777_s23 + $0xd24] ss:$8 sps:$4 sm:$0xff]  }
 0x1c6   : > { %4166 = vmatpush1.bf16.msra.mxu0 %v5831_v15  ;;  %3839 = vmatprep.subr.bf16.mxu1 %v5836_v16  ;;  %v5915_v15 = vld [vmem:[%s6777_s23 + $0xd20] ss:$8 sps:$4 sm:$0xff]   ;;  %v5920_v16 = vld [vmem:[%s6777_s23 + $0x534] ss:$8 sps:$4 sm:$0xff]  }
 0x1c7   : > { %4167 = vmatprep.subr.bf16.mxu0 %v5839_v17  ;;  %v5923_v17 = vld [vmem:[%s6777_s23 + $0xd34] ss:$8 sps:$4 sm:$0xff]  }
 0x1c9   : > { %3840 = vmatpush1.bf16.msra.mxu1 %v5834_v18  ;;  %v5918_v18 = vld [vmem:[%s6777_s23 + $0x530] ss:$8 sps:$4 sm:$0xff]  }
 0x1ca   : > { %4168 = vmatpush1.bf16.msra.mxu0 %v5837_v19  ;;  %3841 = vmatprep.subr.bf16.mxu1 %v5842_v20  ;;  %v5921_v19 = vld [vmem:[%s6777_s23 + $0xd30] ss:$8 sps:$4 sm:$0xff]   ;;  %v5926_v20 = vld [vmem:[%s6777_s23 + $0x544] ss:$8 sps:$4 sm:$0xff]  }
 0x1cb   : > { %4169 = vmatprep.subr.bf16.mxu0 %v5845_v21  ;;  %v5929_v21 = vld [vmem:[%s6777_s23 + $0xd44] ss:$8 sps:$4 sm:$0xff]  }
 0x1cd   : > { %3842 = vmatpush1.bf16.msra.mxu1 %v5840_v22  ;;  %v5924_v22 = vld [vmem:[%s6777_s23 + $0x540] ss:$8 sps:$4 sm:$0xff]  }
 0x1ce   : > { %4170 = vmatpush1.bf16.msra.mxu0 %v5843_v23  ;;  %3843 = vmatprep.subr.bf16.mxu1 %v5848_v26  ;;  %v5927_v23 = vld [vmem:[%s6777_s23 + $0xd40] ss:$8 sps:$4 sm:$0xff]   ;;  %v5932_v26 = vld [vmem:[%s6777_s23 + $0x554] ss:$8 sps:$4 sm:$0xff]  }
 0x1cf   : > { %4171 = vmatprep.subr.bf16.mxu0 %v5851_v27  ;;  %v5935_v27 = vld [vmem:[%s6777_s23 + $0xd54] ss:$8 sps:$4 sm:$0xff]  }
 0x1d1   : > { %3844 = vmatpush1.bf16.msra.mxu1 %v5846_v28  ;;  %v5930_v28 = vld [vmem:[%s6777_s23 + $0x550] ss:$8 sps:$4 sm:$0xff]  }
 0x1d2   : > { %4172 = vmatpush1.bf16.msra.mxu0 %v5849_v29  ;;  %3845 = vmatprep.subr.bf16.mxu1 %v5854_v30  ;;  %v5933_v29 = vld [vmem:[%s6777_s23 + $0xd50] ss:$8 sps:$4 sm:$0xff]   ;;  %v5938_v30 = vld [vmem:[%s6777_s23 + $0x564] ss:$8 sps:$4 sm:$0xff]  }
 0x1d3   : > { %4173 = vmatprep.subr.bf16.mxu0 %v5857_v31  ;;  %v5941_v31 = vld [vmem:[%s6777_s23 + $0xd64] ss:$8 sps:$4 sm:$0xff]  }
 0x1d5   : > { %3846 = vmatpush1.bf16.msra.mxu1 %v5852_v60  ;;  %v5936_v60 = vld [vmem:[%s6777_s23 + $0x560] ss:$8 sps:$4 sm:$0xff]  }
 0x1d6   : > { %4174 = vmatpush1.bf16.msra.mxu0 %v5855_v0  ;;  %3847 = vmatprep.subr.bf16.mxu1 %v5860_v34  ;;  %v5939_v0 = vld [vmem:[%s6777_s23 + $0xd60] ss:$8 sps:$4 sm:$0xff]   ;;  %v5944_v34 = vld [vmem:[%s6777_s23 + $0x574] ss:$8 sps:$4 sm:$0xff]  }
 0x1d7   : > { %4175 = vmatprep.subr.bf16.mxu0 %v5863_v35  ;;  %v5947_v35 = vld [vmem:[%s6777_s23 + $0xd74] ss:$8 sps:$4 sm:$0xff]  }
 0x1d9   : > { %3848 = vmatpush1.bf16.msra.mxu1 %v5858_v36  ;;  %v5942_v36 = vld [vmem:[%s6777_s23 + $0x570] ss:$8 sps:$4 sm:$0xff]  }
 0x1da   : > { %4176 = vmatpush1.bf16.msra.mxu0 %v5861_v37  ;;  %3849 = vmatprep.subr.bf16.mxu1 %v5866_v38  ;;  %v5945_v37 = vld [vmem:[%s6777_s23 + $0xd70] ss:$8 sps:$4 sm:$0xff]   ;;  %v5950_v38 = vld [vmem:[%s6777_s23 + $0x584] ss:$8 sps:$4 sm:$0xff]  }
 0x1db   : > { %4177 = vmatprep.subr.bf16.mxu0 %v5869_v39  ;;  %v5953_v39 = vld [vmem:[%s6777_s23 + $0xd84] ss:$8 sps:$4 sm:$0xff]  }
 0x1dd   : > { %3850 = vmatpush1.bf16.msra.mxu1 %v5864_v40  ;;  %v5948_v40 = vld [vmem:[%s6777_s23 + $0x580] ss:$8 sps:$4 sm:$0xff]  }
 0x1de   : > { %4178 = vmatpush1.bf16.msra.mxu0 %v5867_v41  ;;  %3851 = vmatprep.subr.bf16.mxu1 %v5872_v42  ;;  %v5951_v41 = vld [vmem:[%s6777_s23 + $0xd80] ss:$8 sps:$4 sm:$0xff]   ;;  %v5956_v42 = vld [vmem:[%s6777_s23 + $0x594] ss:$8 sps:$4 sm:$0xff]  }
 0x1df   : > { %4179 = vmatprep.subr.bf16.mxu0 %v5875_v43  ;;  %v5959_v43 = vld [vmem:[%s6777_s23 + $0xd94] ss:$8 sps:$4 sm:$0xff]  }
 0x1e1   : > { %3852 = vmatpush1.bf16.msra.mxu1 %v5870_v25  ;;  %v5954_v25 = vld [vmem:[%s6777_s23 + $0x590] ss:$8 sps:$4 sm:$0xff]  }
 0x1e2   : > { %4180 = vmatpush1.bf16.msra.mxu0 %v5873_v45  ;;  %3853 = vmatprep.subr.bf16.mxu1 %v5878_v50  ;;  %v5957_v45 = vld [vmem:[%s6777_s23 + $0xd90] ss:$8 sps:$4 sm:$0xff]   ;;  %v5962_v50 = vld [vmem:[%s6777_s23 + $0x5a4] ss:$8 sps:$4 sm:$0xff]  }
 0x1e3   : > { %4181 = vmatprep.subr.bf16.mxu0 %v5881_v52  ;;  %v5965_v52 = vld [vmem:[%s6777_s23 + $0xda4] ss:$8 sps:$4 sm:$0xff]  }
 0x1e5   : > { %3854 = vmatpush1.bf16.msra.mxu1 %v5876_v33  ;;  %v5960_v33 = vld [vmem:[%s6777_s23 + $0x5a0] ss:$8 sps:$4 sm:$0xff]  }
 0x1e6   : > { %4182 = vmatpush1.bf16.msra.mxu0 %v5879_v54  ;;  %3855 = vmatprep.subr.bf16.mxu1 %v5884_v44  ;;  %v5963_v54 = vld [vmem:[%s6777_s23 + $0xda0] ss:$8 sps:$4 sm:$0xff]   ;;  %v5968_v44 = vld [vmem:[%s6777_s23 + $0x5b4] ss:$8 sps:$4 sm:$0xff]  }
 0x1e7   : > { %4183 = vmatprep.subr.bf16.mxu0 %v5887_v55  ;;  %v5971_v55 = vld [vmem:[%s6777_s23 + $0xdb4] ss:$8 sps:$4 sm:$0xff]  }
 0x1e9   : > { %3856 = vmatpush1.bf16.msra.mxu1 %v5882_v24  ;;  %v5966_v24 = vld [vmem:[%s6777_s23 + $0x5b0] ss:$8 sps:$4 sm:$0xff]  }
 0x1ea   : > { %4184 = vmatpush1.bf16.msra.mxu0 %v5885_v56  ;;  %3857 = vmatprep.subr.bf16.mxu1 %v5890_v58  ;;  %v5969_v56 = vld [vmem:[%s6777_s23 + $0xdb0] ss:$8 sps:$4 sm:$0xff]   ;;  %v5974_v58 = vld [vmem:[%s6777_s23 + $0x5c4] ss:$8 sps:$4 sm:$0xff]  }
 0x1eb   : > { %4185 = vmatprep.subr.bf16.mxu0 %v5893_v59  ;;  %v5977_v59 = vld [vmem:[%s6777_s23 + $0xdc4] ss:$8 sps:$4 sm:$0xff]  }
 0x1ed   : > { %3858 = vmatpush1.bf16.msra.mxu1 %v5888_v61  ;;  %v5972_v61 = vld [vmem:[%s6777_s23 + $0x5c0] ss:$8 sps:$4 sm:$0xff]  }
 0x1ee   : > { %4186 = vmatpush1.bf16.msra.mxu0 %v5891_v62  ;;  %3859 = vmatprep.subr.bf16.mxu1 %v5896_v63  ;;  %v5975_v62 = vld [vmem:[%s6777_s23 + $0xdc0] ss:$8 sps:$4 sm:$0xff]   ;;  %v5980_v63 = vld [vmem:[%s6777_s23 + $0x5d4] ss:$8 sps:$4 sm:$0xff]  }
 0x1ef   : > { %4187 = vmatprep.subr.bf16.mxu0 %v5899_v1  ;;  %v5983_v1 = vld [vmem:[%s6777_s23 + $0xdd4] ss:$8 sps:$4 sm:$0xff]  }
 0x1f1   : > { %3860 = vmatpush1.bf16.msra.mxu1 %v5894_v46  ;;  %v5978_v46 = vld [vmem:[%s6777_s23 + $0x5d0] ss:$8 sps:$4 sm:$0xff]  }
 0x1f2   : > { %4188 = vmatpush1.bf16.msra.mxu0 %v5897_v47  ;;  %3870 = vmatprep.subr.bf16.mxu1 %v5902_v4  ;;  %v5981_v47 = vld [vmem:[%s6777_s23 + $0xdd0] ss:$8 sps:$4 sm:$0xff]   ;;  %v5986_v4 = vld [vmem:[%s6777_s23 + $0x5e4] ss:$8 sps:$4 sm:$0xff]  }
 0x1f3   : > { %4198 = vmatprep.subr.bf16.mxu0 %v5905_v5  ;;  %v5989_v5 = vld [vmem:[%s6777_s23 + $0xde4] ss:$8 sps:$4 sm:$0xff]  }
 0x1f4   : > { %3862 = vmatmul.mubr.bf16.vlgmr.msra.gmra.mrb[0].mxu1 %v7224_v6 }
 0x1f5   : > { %4190 = vmatmul.mubr.bf16.vlgmr.msra.gmra.mrb[0].mxu0 %v7228_v7  ;;  %3871 = vmatpush1.bf16.msra.mxu1 %v5900_v8  ;;  %v926_v8 = vcombine.high %v7123_v48, %v7123_v48  ;;  %v5990_v48 = vld [vmem:[%s6777_s23 + $0x5f0] ss:$8 sps:$4 sm:$0xff]  }
 0x1f6   : > { %4199 = vmatpush1.bf16.msra.mxu0 %v5903_v9  ;;  %3872 = vmatprep.subr.bf16.mxu1 %v5908_v10  ;;  %v1024_v9 = vcombine.high %v7126_v49, %v7126_v49  ;;  %v5984_v10 = vld [vmem:[%s6777_s23 + $0x5e0] ss:$8 sps:$4 sm:$0xff]   ;;  %v5993_v49 = vld [vmem:[%s6777_s23 + $0xdf0] ss:$8 sps:$4 sm:$0xff]  }
 0x1f7   : > { %4200 = vmatprep.subr.bf16.mxu0 %v5911_v11  ;;  %3902 = vmatprep.mubr.bf16.mxu1 %v973_v32  ;;  %v5987_v11 = vld [vmem:[%s6777_s23 + $0xde0] ss:$8 sps:$4 sm:$0xff]   ;;  %v5992_v32 = vld [vmem:[%s6777_s23 + $0x5f4] ss:$8 sps:$4 sm:$0xff]  }
 0x1f8   : > { %4230 = vmatprep.mubr.bf16.mxu0 %v1071_v12  ;;  %v5995_v12 = vld [vmem:[%s6777_s23 + $0xdf4] ss:$8 sps:$4 sm:$0xff]  }
 0x1f9   : > { %3873 = vmatpush1.bf16.msra.mxu1 %v5906_v53  ;;  %v7301_v53 = vrot.slane %v926_v8, %v6852_v57  ;;  %v6062_v8 = vld [vmem:[%s6777_s23 + $0x6b0] ss:$8 sps:$4 sm:$0xff]  }
 0x1fa   : > { %4201 = vmatpush1.bf16.msra.mxu0 %v5909_v13  ;;  %3874 = vmatprep.subr.bf16.mxu1 %v5914_v2  ;;  %v7304_v13 = vrot.slane %v1024_v9, %v6852_v57  ;;  %v5998_v2 = vld [vmem:[%s6777_s23 + $0x604] ss:$8 sps:$4 sm:$0xff]   ;;  %v6065_v9 = vld [vmem:[%s6777_s23 + $0xeb0] ss:$8 sps:$4 sm:$0xff]  }
 0x1fb   : > { %4202 = vmatprep.subr.bf16.mxu0 %v5917_v14  ;;  %v6001_v14 = vld [vmem:[%s6777_s23 + $0xe04] ss:$8 sps:$4 sm:$0xff]  }
 0x1fd   : > { %3875 = vmatpush1.bf16.msra.mxu1 %v5912_v3  ;;  %v942_v3 = vcombine.high %v7301_v53, %v7301_v53 }
 0x1fe   : > { %4203 = vmatpush1.bf16.msra.mxu0 %v5915_v15  ;;  %3876 = vmatprep.subr.bf16.mxu1 %v5920_v16  ;;  %v1040_v15 = vcombine.high %v7304_v13, %v7304_v13  ;;  %v971_v16 = vcombine.high %v7224_v6, %v7224_v6 }
 0x1ff   : > { %4204 = vmatprep.subr.bf16.mxu0 %v5923_v17  ;;  %v1069_v17 = vcombine.high %v7228_v7, %v7228_v7  ;;  %v6002_v7 = vld [vmem:[%s6777_s23 + $0x610] ss:$8 sps:$4 sm:$0xff]  }
 0x200   : > { %v7326_v6 = vrot.slane %v1040_v15, %v6852_v57  ;;  %v6085_v15 = vld [vmem:[%s6777_s23 + $0xee4] ss:$8 sps:$4 sm:$0xff]  }
 0x201   : > { %3877 = vmatpush1.bf16.msra.mxu1 %v5918_v18  ;;  %v5996_v18 = vld [vmem:[%s6777_s23 + $0x600] ss:$8 sps:$4 sm:$0xff]  }
 0x202   : > { %4205 = vmatpush1.bf16.msra.mxu0 %v5921_v19  ;;  %3878 = vmatprep.subr.bf16.mxu1 %v5926_v20  ;;  %v5999_v19 = vld [vmem:[%s6777_s23 + $0xe00] ss:$8 sps:$4 sm:$0xff]   ;;  %v6004_v20 = vld [vmem:[%s6777_s23 + $0x614] ss:$8 sps:$4 sm:$0xff]  }
 0x203   : > { %4206 = vmatprep.subr.bf16.mxu0 %v5929_v21  ;;  %v6007_v21 = vld [vmem:[%s6777_s23 + $0xe14] ss:$8 sps:$4 sm:$0xff]  }
 0x205   : > { %3879 = vmatpush1.bf16.msra.mxu1 %v5924_v22  ;;  %v7323_v22 = vrot.slane %v942_v3, %v6852_v57  ;;  %v6082_v3 = vld [vmem:[%s6777_s23 + $0x6e4] ss:$8 sps:$4 sm:$0xff]  }
 0x206   : > { %4207 = vmatpush1.bf16.msra.mxu0 %v5927_v23  ;;  %3880 = vmatprep.subr.bf16.mxu1 %v5932_v26  ;;  %v6005_v23 = vld [vmem:[%s6777_s23 + $0xe10] ss:$8 sps:$4 sm:$0xff]   ;;  %v6010_v26 = vld [vmem:[%s6777_s23 + $0x624] ss:$8 sps:$4 sm:$0xff]  }
 0x207   : > { %4208 = vmatprep.subr.bf16.mxu0 %v5935_v27  ;;  %v6013_v27 = vld [vmem:[%s6777_s23 + $0xe24] ss:$8 sps:$4 sm:$0xff]  }
 0x209   : > { %3881 = vmatpush1.bf16.msra.mxu1 %v5930_v28  ;;  %v6008_v28 = vld [vmem:[%s6777_s23 + $0x620] ss:$8 sps:$4 sm:$0xff]  }
 0x20a   : > { %4209 = vmatpush1.bf16.msra.mxu0 %v5933_v29  ;;  %3882 = vmatprep.subr.bf16.mxu1 %v5938_v30  ;;  %v6011_v29 = vld [vmem:[%s6777_s23 + $0xe20] ss:$8 sps:$4 sm:$0xff]   ;;  %v6016_v30 = vld [vmem:[%s6777_s23 + $0x634] ss:$8 sps:$4 sm:$0xff]  }
 0x20b   : > { %4210 = vmatprep.subr.bf16.mxu0 %v5941_v31  ;;  %v6019_v31 = vld [vmem:[%s6777_s23 + $0xe34] ss:$8 sps:$4 sm:$0xff]  }
 0x20d   : > { %3883 = vmatpush1.bf16.msra.mxu1 %v5936_v60  ;;  %v6014_v60 = vld [vmem:[%s6777_s23 + $0x630] ss:$8 sps:$4 sm:$0xff]  }
 0x20e   : > { %4211 = vmatpush1.bf16.msra.mxu0 %v5939_v0  ;;  %3884 = vmatprep.subr.bf16.mxu1 %v5944_v34  ;;  %v6017_v0 = vld [vmem:[%s6777_s23 + $0xe30] ss:$8 sps:$4 sm:$0xff]   ;;  %v6022_v34 = vld [vmem:[%s6777_s23 + $0x644] ss:$8 sps:$4 sm:$0xff]  }
 0x20f   : > { %4212 = vmatprep.subr.bf16.mxu0 %v5947_v35  ;;  %v6025_v35 = vld [vmem:[%s6777_s23 + $0xe44] ss:$8 sps:$4 sm:$0xff]  }
 0x211   : > { %3885 = vmatpush1.bf16.msra.mxu1 %v5942_v36  ;;  %v6020_v36 = vld [vmem:[%s6777_s23 + $0x640] ss:$8 sps:$4 sm:$0xff]  }
 0x212   : > { %4213 = vmatpush1.bf16.msra.mxu0 %v5945_v37  ;;  %3886 = vmatprep.subr.bf16.mxu1 %v5950_v38  ;;  %v6023_v37 = vld [vmem:[%s6777_s23 + $0xe40] ss:$8 sps:$4 sm:$0xff]   ;;  %v6028_v38 = vld [vmem:[%s6777_s23 + $0x654] ss:$8 sps:$4 sm:$0xff]  }
 0x213   : > { %4214 = vmatprep.subr.bf16.mxu0 %v5953_v39  ;;  %v6031_v39 = vld [vmem:[%s6777_s23 + $0xe54] ss:$8 sps:$4 sm:$0xff]  }
 0x215   : > { %3887 = vmatpush1.bf16.msra.mxu1 %v5948_v40  ;;  %v6026_v40 = vld [vmem:[%s6777_s23 + $0x650] ss:$8 sps:$4 sm:$0xff]  }
 0x216   : > { %4215 = vmatpush1.bf16.msra.mxu0 %v5951_v41  ;;  %3888 = vmatprep.subr.bf16.mxu1 %v5956_v42  ;;  %v6029_v41 = vld [vmem:[%s6777_s23 + $0xe50] ss:$8 sps:$4 sm:$0xff]   ;;  %v6034_v42 = vld [vmem:[%s6777_s23 + $0x664] ss:$8 sps:$4 sm:$0xff]  }
 0x217   : > { %4216 = vmatprep.subr.bf16.mxu0 %v5959_v43  ;;  %v6037_v43 = vld [vmem:[%s6777_s23 + $0xe64] ss:$8 sps:$4 sm:$0xff]  }
 0x219   : > { %3889 = vmatpush1.bf16.msra.mxu1 %v5954_v25  ;;  %v6032_v25 = vld [vmem:[%s6777_s23 + $0x660] ss:$8 sps:$4 sm:$0xff]  }
 0x21a   : > { %4217 = vmatpush1.bf16.msra.mxu0 %v5957_v45  ;;  %3890 = vmatprep.subr.bf16.mxu1 %v5962_v50  ;;  %v6035_v45 = vld [vmem:[%s6777_s23 + $0xe60] ss:$8 sps:$4 sm:$0xff]   ;;  %v6040_v50 = vld [vmem:[%s6777_s23 + $0x674] ss:$8 sps:$4 sm:$0xff]  }
 0x21b   : > { %4218 = vmatprep.subr.bf16.mxu0 %v5965_v52  ;;  %v6043_v52 = vld [vmem:[%s6777_s23 + $0xe74] ss:$8 sps:$4 sm:$0xff]  }
 0x21d   : > { %3891 = vmatpush1.bf16.msra.mxu1 %v5960_v33  ;;  %v6038_v33 = vld [vmem:[%s6777_s23 + $0x670] ss:$8 sps:$4 sm:$0xff]  }
 0x21e   : > { %4219 = vmatpush1.bf16.msra.mxu0 %v5963_v54  ;;  %3892 = vmatprep.subr.bf16.mxu1 %v5968_v44  ;;  %v6041_v54 = vld [vmem:[%s6777_s23 + $0xe70] ss:$8 sps:$4 sm:$0xff]   ;;  %v6046_v44 = vld [vmem:[%s6777_s23 + $0x684] ss:$8 sps:$4 sm:$0xff]  }
 0x21f   : > { %4220 = vmatprep.subr.bf16.mxu0 %v5971_v55  ;;  %v6049_v55 = vld [vmem:[%s6777_s23 + $0xe84] ss:$8 sps:$4 sm:$0xff]  }
 0x221   : > { %3893 = vmatpush1.bf16.msra.mxu1 %v5966_v24  ;;  %v6044_v24 = vld [vmem:[%s6777_s23 + $0x680] ss:$8 sps:$4 sm:$0xff]  }
 0x222   : > { %4221 = vmatpush1.bf16.msra.mxu0 %v5969_v56  ;;  %3894 = vmatprep.subr.bf16.mxu1 %v5974_v58  ;;  %v6047_v56 = vld [vmem:[%s6777_s23 + $0xe80] ss:$8 sps:$4 sm:$0xff]   ;;  %v6052_v58 = vld [vmem:[%s6777_s23 + $0x694] ss:$8 sps:$4 sm:$0xff]  }
 0x223   : > { %4222 = vmatprep.subr.bf16.mxu0 %v5977_v59  ;;  %v6055_v59 = vld [vmem:[%s6777_s23 + $0xe94] ss:$8 sps:$4 sm:$0xff]  }
 0x225   : > { %3895 = vmatpush1.bf16.msra.mxu1 %v5972_v61  ;;  %v6050_v61 = vld [vmem:[%s6777_s23 + $0x690] ss:$8 sps:$4 sm:$0xff]  }
 0x226   : > { %4223 = vmatpush1.bf16.msra.mxu0 %v5975_v62  ;;  %3896 = vmatprep.subr.bf16.mxu1 %v5980_v63  ;;  %v6053_v62 = vld [vmem:[%s6777_s23 + $0xe90] ss:$8 sps:$4 sm:$0xff]   ;;  %v6058_v63 = vld [vmem:[%s6777_s23 + $0x6a4] ss:$8 sps:$4 sm:$0xff]  }
 0x227   : > { %4224 = vmatprep.subr.bf16.mxu0 %v5983_v1  ;;  %v6061_v1 = vld [vmem:[%s6777_s23 + $0xea4] ss:$8 sps:$4 sm:$0xff]  }
 0x229   : > { %3897 = vmatpush1.bf16.msra.mxu1 %v5978_v46  ;;  %v6056_v46 = vld [vmem:[%s6777_s23 + $0x6a0] ss:$8 sps:$4 sm:$0xff]  }
 0x22a   : > { %4225 = vmatpush1.bf16.msra.mxu0 %v5981_v47  ;;  %3898 = vmatprep.subr.bf16.mxu1 %v5986_v4  ;;  %v6059_v47 = vld [vmem:[%s6777_s23 + $0xea0] ss:$8 sps:$4 sm:$0xff]   ;;  %v6064_v4 = vld [vmem:[%s6777_s23 + $0x6b4] ss:$8 sps:$4 sm:$0xff]  }
 0x22b   : > { %4226 = vmatprep.subr.bf16.mxu0 %v5989_v5  ;;  %v6067_v5 = vld [vmem:[%s6777_s23 + $0xeb4] ss:$8 sps:$4 sm:$0xff]  }
 0x22d   : > { %3899 = vmatpush1.bf16.msra.mxu1 %v5984_v10  ;;  %v6070_v10 = vld [vmem:[%s6777_s23 + $0x6c4] ss:$8 sps:$4 sm:$0xff]  }
 0x22e   : > { %4227 = vmatpush1.bf16.msra.mxu0 %v5987_v11  ;;  %3900 = vmatprep.subr.bf16.mxu1 %v5992_v32  ;;  %v6073_v11 = vld [vmem:[%s6777_s23 + $0xec4] ss:$8 sps:$4 sm:$0xff]   ;;  %v6068_v32 = vld [vmem:[%s6777_s23 + $0x6c0] ss:$8 sps:$4 sm:$0xff]  }
 0x22f   : > { %4228 = vmatprep.subr.bf16.mxu0 %v5995_v12  ;;  %v6071_v12 = vld [vmem:[%s6777_s23 + $0xec0] ss:$8 sps:$4 sm:$0xff]  }
 0x231   : > { %3901 = vmatpush1.bf16.msra.mxu1 %v5990_v48  ;;  %v6076_v48 = vld [vmem:[%s6777_s23 + $0x6d4] ss:$8 sps:$4 sm:$0xff]  }
 0x232   : > { %4229 = vmatpush1.bf16.msra.mxu0 %v5993_v49  ;;  %3911 = vmatprep.subr.bf16.mxu1 %v5998_v2  ;;  %v6079_v49 = vld [vmem:[%s6777_s23 + $0xed4] ss:$8 sps:$4 sm:$0xff]   ;;  %v6074_v2 = vld [vmem:[%s6777_s23 + $0x6d0] ss:$8 sps:$4 sm:$0xff]  }
 0x233   : > { %4239 = vmatprep.subr.bf16.mxu0 %v6001_v14  ;;  %v6077_v14 = vld [vmem:[%s6777_s23 + $0xed0] ss:$8 sps:$4 sm:$0xff]  }
 0x234   : > { %3903 = vmatmul.mubr.bf16.vlgmr.msra.gmra.mrb[0].mxu1 %v971_v16  ;;  %v6080_v16 = vld [vmem:[%s6777_s23 + $0x6e0] ss:$8 sps:$4 sm:$0xff]  }
 0x235   : > { %4231 = vmatmul.mubr.bf16.vlgmr.msra.gmra.mrb[0].mxu0 %v1069_v17  ;;  %3912 = vmatpush1.bf16.msra.mxu1 %v5996_v18  ;;  %v6083_v17 = vld [vmem:[%s6777_s23 + $0xee0] ss:$8 sps:$4 sm:$0xff]   ;;  %v6088_v18 = vld [vmem:[%s6777_s23 + $0x6f4] ss:$8 sps:$4 sm:$0xff]  }
 0x236   : > { %4240 = vmatpush1.bf16.msra.mxu0 %v5999_v19  ;;  %3913 = vmatprep.subr.bf16.mxu1 %v6004_v20  ;;  %v6091_v19 = vld [vmem:[%s6777_s23 + $0xef4] ss:$8 sps:$4 sm:$0xff]   ;;  %v6086_v20 = vld [vmem:[%s6777_s23 + $0x6f0] ss:$8 sps:$4 sm:$0xff]  }
 0x237   : > { %4241 = vmatprep.subr.bf16.mxu0 %v6007_v21  ;;  %3943 = vmatprep.mubr.bf16.mxu1 %v7323_v22  ;;  %v6089_v21 = vld [vmem:[%s6777_s23 + $0xef0] ss:$8 sps:$4 sm:$0xff]  }
 0x238   : > { %4271 = vmatprep.mubr.bf16.mxu0 %v7326_v6 }
 0x239   : > { %3914 = vmatpush1.bf16.msra.mxu1 %v6002_v7  ;;  %v6095_v7 = vld [vmem:[%s6777_s23 + $0x704] ss:$8 sps:$4 sm:$0xff]  }
 0x23a   : > { %4242 = vmatpush1.bf16.msra.mxu0 %v6005_v23  ;;  %3915 = vmatprep.subr.bf16.mxu1 %v6010_v26  ;;  %v6099_v23 = vld [vmem:[%s6777_s23 + $0xf04] ss:$8 sps:$4 sm:$0xff]   ;;  %v7392_v26 = vrot.slane %v7301_v53, %v6852_v57  ;;  %v974_v53 = vcombine.high %v7323_v22, %v7323_v22 }
 0x23b   : > { %4243 = vmatprep.subr.bf16.mxu0 %v6013_v27  ;;  %v7396_v27 = vrot.slane %v7304_v13, %v6852_v57  ;;  %v6100_v57 = vld [vmem:[%s6777_s23 + $0x710] ss:$8 sps:$4 sm:$0xff]   ;;  %v6108_v22 = vld [vmem:[%s6777_s23 + $0x724] ss:$8 sps:$4 sm:$0xff]  }
 0x23c   : > { %v6103_v13 = vld [vmem:[%s6777_s23 + $0xf10] ss:$8 sps:$4 sm:$0xff]  }
 0x23d   : > { %3916 = vmatpush1.bf16.msra.mxu1 %v6008_v28  ;;  %v6093_v28 = vld [vmem:[%s6777_s23 + $0x700] ss:$8 sps:$4 sm:$0xff]  }
 0x23e   : > { %4244 = vmatpush1.bf16.msra.mxu0 %v6011_v29  ;;  %3917 = vmatprep.subr.bf16.mxu1 %v6016_v30  ;;  %v6097_v29 = vld [vmem:[%s6777_s23 + $0xf00] ss:$8 sps:$4 sm:$0xff]   ;;  %v6102_v30 = vld [vmem:[%s6777_s23 + $0x714] ss:$8 sps:$4 sm:$0xff]  }
 0x23f   : > { %4245 = vmatprep.subr.bf16.mxu0 %v6019_v31  ;;  %v6105_v31 = vld [vmem:[%s6777_s23 + $0xf14] ss:$8 sps:$4 sm:$0xff]  }
 0x241   : > { %3918 = vmatpush1.bf16.msra.mxu1 %v6014_v60  ;;  %v1072_v60 = vcombine.high %v7326_v6, %v7326_v6  ;;  %v6106_v6 = vld [vmem:[%s6777_s23 + $0x720] ss:$8 sps:$4 sm:$0xff]  }
 0x242   : > { %4246 = vmatpush1.bf16.msra.mxu0 %v6017_v0  ;;  %3919 = vmatprep.subr.bf16.mxu1 %v6022_v34  ;;  %v6111_v0 = vld [vmem:[%s6777_s23 + $0xf24] ss:$8 sps:$4 sm:$0xff]   ;;  %v6109_v34 = vld [vmem:[%s6777_s23 + $0xf20] ss:$8 sps:$4 sm:$0xff]  }
 0x243   : > { %4247 = vmatprep.subr.bf16.mxu0 %v6025_v35  ;;  %v6114_v35 = vld [vmem:[%s6777_s23 + $0x734] ss:$8 sps:$4 sm:$0xff]  }
 0x245   : > { %3920 = vmatpush1.bf16.msra.mxu1 %v6020_v36  ;;  %v6117_v36 = vld [vmem:[%s6777_s23 + $0xf34] ss:$8 sps:$4 sm:$0xff]  }
 0x246   : > { %4248 = vmatpush1.bf16.msra.mxu0 %v6023_v37  ;;  %3921 = vmatprep.subr.bf16.mxu1 %v6028_v38  ;;  %v6112_v37 = vld [vmem:[%s6777_s23 + $0x730] ss:$8 sps:$4 sm:$0xff]  }
 0x247   : > { %4249 = vmatprep.subr.bf16.mxu0 %v6031_v39  ;;  %v6115_v38 = vld [vmem:[%s6777_s23 + $0xf30] ss:$8 sps:$4 sm:$0xff]   ;;  %v6120_v39 = vld [vmem:[%s6777_s23 + $0x744] ss:$8 sps:$4 sm:$0xff]  }
 0x249   : > { %3922 = vmatpush1.bf16.msra.mxu1 %v6026_v40  ;;  %v6123_v40 = vld [vmem:[%s6777_s23 + $0xf44] ss:$8 sps:$4 sm:$0xff]  }
 0x24a   : > { %4250 = vmatpush1.bf16.msra.mxu0 %v6029_v41  ;;  %3923 = vmatprep.subr.bf16.mxu1 %v6034_v42  ;;  %v6118_v41 = vld [vmem:[%s6777_s23 + $0x740] ss:$8 sps:$4 sm:$0xff]  }
 0x24b   : > { %4251 = vmatprep.subr.bf16.mxu0 %v6037_v43  ;;  %v6121_v42 = vld [vmem:[%s6777_s23 + $0xf40] ss:$8 sps:$4 sm:$0xff]   ;;  %v6126_v43 = vld [vmem:[%s6777_s23 + $0x754] ss:$8 sps:$4 sm:$0xff]  }
 0x24d   : > { %3924 = vmatpush1.bf16.msra.mxu1 %v6032_v25  ;;  %v6129_v25 = vld [vmem:[%s6777_s23 + $0xf54] ss:$8 sps:$4 sm:$0xff]  }
 0x24e   : > { %4252 = vmatpush1.bf16.msra.mxu0 %v6035_v45  ;;  %3925 = vmatprep.subr.bf16.mxu1 %v6040_v50  ;;  %v6124_v45 = vld [vmem:[%s6777_s23 + $0x750] ss:$8 sps:$4 sm:$0xff]  }
 0x24f   : > { %4253 = vmatprep.subr.bf16.mxu0 %v6043_v52  ;;  %v6127_v50 = vld [vmem:[%s6777_s23 + $0xf50] ss:$8 sps:$4 sm:$0xff]   ;;  %v6132_v52 = vld [vmem:[%s6777_s23 + $0x764] ss:$8 sps:$4 sm:$0xff]  }
 0x251   : > { %3926 = vmatpush1.bf16.msra.mxu1 %v6038_v33  ;;  %v6135_v33 = vld [vmem:[%s6777_s23 + $0xf64] ss:$8 sps:$4 sm:$0xff]  }
 0x252   : > { %4254 = vmatpush1.bf16.msra.mxu0 %v6041_v54  ;;  %3927 = vmatprep.subr.bf16.mxu1 %v6046_v44  ;;  %v6130_v54 = vld [vmem:[%s6777_s23 + $0x760] ss:$8 sps:$4 sm:$0xff]  }
 0x253   : > { %4255 = vmatprep.subr.bf16.mxu0 %v6049_v55  ;;  %v6133_v44 = vld [vmem:[%s6777_s23 + $0xf60] ss:$8 sps:$4 sm:$0xff]   ;;  %v6138_v55 = vld [vmem:[%s6777_s23 + $0x774] ss:$8 sps:$4 sm:$0xff]  }
 0x255   : > { %3928 = vmatpush1.bf16.msra.mxu1 %v6044_v24  ;;  %v6141_v24 = vld [vmem:[%s6777_s23 + $0xf74] ss:$8 sps:$4 sm:$0xff]  }
 0x256   : > { %4256 = vmatpush1.bf16.msra.mxu0 %v6047_v56  ;;  %3929 = vmatprep.subr.bf16.mxu1 %v6052_v58  ;;  %v6136_v56 = vld [vmem:[%s6777_s23 + $0x770] ss:$8 sps:$4 sm:$0xff]  }
 0x257   : > { %4257 = vmatprep.subr.bf16.mxu0 %v6055_v59  ;;  %v6139_v58 = vld [vmem:[%s6777_s23 + $0xf70] ss:$8 sps:$4 sm:$0xff]   ;;  %v6144_v59 = vld [vmem:[%s6777_s23 + $0x784] ss:$8 sps:$4 sm:$0xff]  }
 0x259   : > { %3930 = vmatpush1.bf16.msra.mxu1 %v6050_v61  ;;  %v6147_v61 = vld [vmem:[%s6777_s23 + $0xf84] ss:$8 sps:$4 sm:$0xff]  }
 0x25a   : > { %4258 = vmatpush1.bf16.msra.mxu0 %v6053_v62  ;;  %3931 = vmatprep.subr.bf16.mxu1 %v6058_v63  ;;  %v6142_v62 = vld [vmem:[%s6777_s23 + $0x780] ss:$8 sps:$4 sm:$0xff]  }
 0x25b   : > { %4259 = vmatprep.subr.bf16.mxu0 %v6061_v1  ;;  %v6145_v63 = vld [vmem:[%s6777_s23 + $0xf80] ss:$8 sps:$4 sm:$0xff]   ;;  %v6150_v1 = vld [vmem:[%s6777_s23 + $0x794] ss:$8 sps:$4 sm:$0xff]  }
 0x25d   : > { %3932 = vmatpush1.bf16.msra.mxu1 %v6056_v46  ;;  %v6153_v46 = vld [vmem:[%s6777_s23 + $0xf94] ss:$8 sps:$4 sm:$0xff]  }
 0x25e   : > { %4260 = vmatpush1.bf16.msra.mxu0 %v6059_v47  ;;  %3933 = vmatprep.subr.bf16.mxu1 %v6064_v4  ;;  %v6148_v47 = vld [vmem:[%s6777_s23 + $0x790] ss:$8 sps:$4 sm:$0xff]  }
 0x25f   : > { %4261 = vmatprep.subr.bf16.mxu0 %v6067_v5  ;;  %v6151_v4 = vld [vmem:[%s6777_s23 + $0xf90] ss:$8 sps:$4 sm:$0xff]   ;;  %v6156_v5 = vld [vmem:[%s6777_s23 + $0x7a4] ss:$8 sps:$4 sm:$0xff]  }
 0x261   : > { %3934 = vmatpush1.bf16.msra.mxu1 %v6062_v8  ;;  %v6159_v8 = vld [vmem:[%s6777_s23 + $0xfa4] ss:$8 sps:$4 sm:$0xff]  }
 0x262   : > { %4262 = vmatpush1.bf16.msra.mxu0 %v6065_v9  ;;  %3935 = vmatprep.subr.bf16.mxu1 %v6070_v10  ;;  %v6154_v9 = vld [vmem:[%s6777_s23 + $0x7a0] ss:$8 sps:$4 sm:$0xff]  }
 0x263   : > { %4263 = vmatprep.subr.bf16.mxu0 %v6073_v11  ;;  %v6157_v10 = vld [vmem:[%s6777_s23 + $0xfa0] ss:$8 sps:$4 sm:$0xff]   ;;  %v6162_v11 = vld [vmem:[%s6777_s23 + $0x7b4] ss:$8 sps:$4 sm:$0xff]  }
 0x265   : > { %3936 = vmatpush1.bf16.msra.mxu1 %v6068_v32  ;;  %v6165_v32 = vld [vmem:[%s6777_s23 + $0xfb4] ss:$8 sps:$4 sm:$0xff]  }
 0x266   : > { %4264 = vmatpush1.bf16.msra.mxu0 %v6071_v12  ;;  %3937 = vmatprep.subr.bf16.mxu1 %v6076_v48  ;;  %v6160_v12 = vld [vmem:[%s6777_s23 + $0x7b0] ss:$8 sps:$4 sm:$0xff]  }
 0x267   : > { %4265 = vmatprep.subr.bf16.mxu0 %v6079_v49  ;;  %v6163_v48 = vld [vmem:[%s6777_s23 + $0xfb0] ss:$8 sps:$4 sm:$0xff]   ;;  %v6168_v49 = vld [vmem:[%s6777_s23 + $0x7c4] ss:$8 sps:$4 sm:$0xff]  }
 0x269   : > { %3938 = vmatpush1.bf16.msra.mxu1 %v6074_v2  ;;  %v6171_v2 = vld [vmem:[%s6777_s23 + $0xfc4] ss:$8 sps:$4 sm:$0xff]  }
 0x26a   : > { %4266 = vmatpush1.bf16.msra.mxu0 %v6077_v14  ;;  %3939 = vmatprep.subr.bf16.mxu1 %v6082_v3  ;;  %v6166_v14 = vld [vmem:[%s6777_s23 + $0x7c0] ss:$8 sps:$4 sm:$0xff]  }
 0x26b   : > { %4267 = vmatprep.subr.bf16.mxu0 %v6085_v15  ;;  %v6169_v3 = vld [vmem:[%s6777_s23 + $0xfc0] ss:$8 sps:$4 sm:$0xff]   ;;  %v6174_v15 = vld [vmem:[%s6777_s23 + $0x7d4] ss:$8 sps:$4 sm:$0xff]  }
 0x26d   : > { %3940 = vmatpush1.bf16.msra.mxu1 %v6080_v16  ;;  %v6177_v16 = vld [vmem:[%s6777_s23 + $0xfd4] ss:$8 sps:$4 sm:$0xff]  }
 0x26e   : > { %4268 = vmatpush1.bf16.msra.mxu0 %v6083_v17  ;;  %3941 = vmatprep.subr.bf16.mxu1 %v6088_v18  ;;  %v6172_v17 = vld [vmem:[%s6777_s23 + $0x7d0] ss:$8 sps:$4 sm:$0xff]  }
 0x26f   : > { %4269 = vmatprep.subr.bf16.mxu0 %v6091_v19  ;;  %v6175_v18 = vld [vmem:[%s6777_s23 + $0xfd0] ss:$8 sps:$4 sm:$0xff]   ;;  %v6180_v19 = vld [vmem:[%s6777_s23 + $0x7e4] ss:$8 sps:$4 sm:$0xff]  }
 0x271   : > { %3942 = vmatpush1.bf16.msra.mxu1 %v6086_v20  ;;  %v6183_v20 = vld [vmem:[%s6777_s23 + $0xfe4] ss:$8 sps:$4 sm:$0xff]  }
 0x272   : > { %4270 = vmatpush1.bf16.msra.mxu0 %v6089_v21  ;;  %3952 = vmatprep.subr.bf16.mxu1 %v6095_v7  ;;  %v6178_v21 = vld [vmem:[%s6777_s23 + $0x7e0] ss:$8 sps:$4 sm:$0xff]  }
 0x273   : > { %4280 = vmatprep.subr.bf16.mxu0 %v6099_v23  ;;  %v6181_v7 = vld [vmem:[%s6777_s23 + $0xfe0] ss:$8 sps:$4 sm:$0xff]   ;;  %v6186_v23 = vld [vmem:[%s6777_s23 + $0x7f4] ss:$8 sps:$4 sm:$0xff]  }
 0x274   : > { %3944 = vmatmul.mubr.bf16.vlgmr.msra.gmra.mrb[0].mxu1 %v7392_v26 }
 0x275   : > { %4272 = vmatmul.mubr.bf16.vlgmr.msra.gmra.mrb[0].mxu0 %v7396_v27  ;;  %3953 = vmatpush1.bf16.msra.mxu1 %v6093_v28  ;;  %v6189_v28 = vld [vmem:[%s6777_s23 + $0xff4] ss:$8 sps:$4 sm:$0xff]  }
 0x276   : > { %4281 = vmatpush1.bf16.msra.mxu0 %v6097_v29  ;;  %3954 = vmatprep.subr.bf16.mxu1 %v6102_v30  ;;  %v6184_v29 = vld [vmem:[%s6777_s23 + $0x7f0] ss:$8 sps:$4 sm:$0xff]  }
 0x277   : > { %4282 = vmatprep.subr.bf16.mxu0 %v6105_v31  ;;  %3984 = vmatprep.mubr.bf16.mxu1 %v974_v53  ;;  %v6187_v30 = vld [vmem:[%s6777_s23 + $0xff0] ss:$8 sps:$4 sm:$0xff]   ;;  %v972_v31 = vcombine.high %v7392_v26, %v7392_v26  ;;  %v1070_v53 = vcombine.high %v7396_v27, %v7396_v27 }
 0x278   : > { %4312 = vmatprep.mubr.bf16.mxu0 %v1072_v60  ;;  %v6443_v60 = vmov 1983009808  }
 0x279   : > { %3955 = vmatpush1.bf16.msra.mxu1 %v6100_v57  ;;  %v4325_v57 = vunpack.c.l.s4 %v6443_v60  ;;  %v4371_v60 = vld [vmem:[%s6801_s27 + $0xf8] sm:$0xff] (!%p5144_p1) }
 0x27a   : > { %4283 = vmatpush1.bf16.msra.mxu0 %v6103_v13  ;;  %3956 = vmatprep.subr.bf16.mxu1 %v6108_v22 }
 0x27b   : > { %4284 = vmatprep.subr.bf16.mxu0 %v6111_v0  ;;  %v4326_v13 = vunpack.c.0.s8 %v4325_v57 }
 0x27d   : > { %3957 = vmatpush1.bf16.msra.mxu1 %v6106_v6 }
 0x27e   : > { %4285 = vmatpush1.bf16.msra.mxu0 %v6109_v34  ;;  %3958 = vmatprep.subr.bf16.mxu1 %v6114_v35 }
 0x27f   : > { %4286 = vmatprep.subr.bf16.mxu0 %v6117_v36 }
 0x281   : > { %3959 = vmatpush1.bf16.msra.mxu1 %v6112_v37  ;;  %v4329_v37 = vsub.s32 %v4326_v13, %v6844_v51  ;;  %v4356_v51 = vld [vmem:[%s6801_s27 + $0x80] sm:$0xff] (!%p5144_p1) }
 0x282   : > { %4287 = vmatpush1.bf16.msra.mxu0 %v6115_v38  ;;  %3960 = vmatprep.subr.bf16.mxu1 %v6120_v39 }
 0x283   : > { %4288 = vmatprep.subr.bf16.mxu0 %v6123_v40 }
 0x285   : > { %3961 = vmatpush1.bf16.msra.mxu1 %v6118_v41  ;;  %v356_v41 = vld [vmem:[#allocation2] sm:$0xf] }
 0x286   : > { %4289 = vmatpush1.bf16.msra.mxu0 %v6121_v42  ;;  %3962 = vmatprep.subr.bf16.mxu1 %v6126_v43 }
 0x287   : > { %4290 = vmatprep.subr.bf16.mxu0 %v6129_v25  ;;  %v4357_v25 = vld [vmem:[%s6801_s27 + $0x88] sm:$0xff] (!%p5144_p1) }
 0x289   : > { %3963 = vmatpush1.bf16.msra.mxu1 %v6124_v45  ;;  %v4340_v45 = vld [vmem:[%s6801_s27] sm:$0xff] (!%p5144_p1) }
 0x28a   : > { %4291 = vmatpush1.bf16.msra.mxu0 %v6127_v50  ;;  %3964 = vmatprep.subr.bf16.mxu1 %v6132_v52  ;;  %v5187_v50 = vpack.c.bf16 (!%p5144_p1), %v4357_v25, %v4356_v51  ;;  %v4341_v52 = vld [vmem:[%s6801_s27 + $0x8] sm:$0xff] (!%p5144_p1) }
 0x28b   : > { %4292 = vmatprep.subr.bf16.mxu0 %v6135_v33  ;;  %v4358_v33 = vld [vmem:[%s6801_s27 + $0x90] sm:$0xff] (!%p5144_p1) }
 0x28d   : > { %3965 = vmatpush1.bf16.msra.mxu1 %v6130_v54  ;;  %v4359_v54 = vld [vmem:[%s6801_s27 + $0x98] sm:$0xff] (!%p5144_p1) }
 0x28e   : > { %4293 = vmatpush1.bf16.msra.mxu0 %v6133_v44  ;;  %3966 = vmatprep.subr.bf16.mxu1 %v6138_v55  ;;  %v5189_v44 = vpack.c.bf16 (!%p5144_p1), %v4341_v52, %v4340_v45  ;;  %v5191_v55 = vpack.c.bf16 (!%p5144_p1), %v4359_v54, %v4358_v33 }
 0x28f   : > { %4294 = vmatprep.subr.bf16.mxu0 %v6141_v24  ;;  %v4342_v24 = vld [vmem:[%s6801_s27 + $0x10] sm:$0xff] (!%p5144_p1) }
 0x291   : > { %3967 = vmatpush1.bf16.msra.mxu1 %v6136_v56  ;;  %v4343_v56 = vld [vmem:[%s6801_s27 + $0x18] sm:$0xff] (!%p5144_p1) }
 0x292   : > { %4295 = vmatpush1.bf16.msra.mxu0 %v6139_v58  ;;  %3968 = vmatprep.subr.bf16.mxu1 %v6144_v59  ;;  %v4360_v58 = vld [vmem:[%s6801_s27 + $0xa0] sm:$0xff] (!%p5144_p1)  ;;  %v4361_v59 = vld [vmem:[%s6801_s27 + $0xa8] sm:$0xff] (!%p5144_p1) }
 0x293   : > { %4296 = vmatprep.subr.bf16.mxu0 %v6147_v61  ;;  %v5193_v61 = vpack.c.bf16 (!%p5144_p1), %v4343_v56, %v4342_v24 }
 0x295   : > { %3969 = vmatpush1.bf16.msra.mxu1 %v6142_v62  ;;  %v5195_v62 = vpack.c.bf16 (!%p5144_p1), %v4361_v59, %v4360_v58 }
 0x296   : > { %4297 = vmatpush1.bf16.msra.mxu0 %v6145_v63  ;;  %3970 = vmatprep.subr.bf16.mxu1 %v6150_v1  ;;  %v4344_v63 = vld [vmem:[%s6801_s27 + $0x20] sm:$0xff] (!%p5144_p1)  ;;  %v4345_v1 = vld [vmem:[%s6801_s27 + $0x28] sm:$0xff] (!%p5144_p1) }
 0x297   : > { %4298 = vmatprep.subr.bf16.mxu0 %v6153_v46  ;;  %v4362_v46 = vld [vmem:[%s6801_s27 + $0xb0] sm:$0xff] (!%p5144_p1) }
 0x299   : > { %3971 = vmatpush1.bf16.msra.mxu1 %v6148_v47  ;;  %v4363_v47 = vld [vmem:[%s6801_s27 + $0xb8] sm:$0xff] (!%p5144_p1) }
 0x29a   : > { %4299 = vmatpush1.bf16.msra.mxu0 %v6151_v4  ;;  %3972 = vmatprep.subr.bf16.mxu1 %v6156_v5  ;;  %v5197_v4 = vpack.c.bf16 (!%p5144_p1), %v4345_v1, %v4344_v63  ;;  %v5199_v5 = vpack.c.bf16 (!%p5144_p1), %v4363_v47, %v4362_v46 }
 0x29b   : > { %4300 = vmatprep.subr.bf16.mxu0 %v6159_v8  ;;  %v4346_v8 = vld [vmem:[%s6801_s27 + $0x30] sm:$0xff] (!%p5144_p1) }
 0x29d   : > { %3973 = vmatpush1.bf16.msra.mxu1 %v6154_v9  ;;  %v4347_v9 = vld [vmem:[%s6801_s27 + $0x38] sm:$0xff] (!%p5144_p1) }
 0x29e   : > { %4301 = vmatpush1.bf16.msra.mxu0 %v6157_v10  ;;  %3974 = vmatprep.subr.bf16.mxu1 %v6162_v11  ;;  %v4364_v10 = vld [vmem:[%s6801_s27 + $0xc0] sm:$0xff] (!%p5144_p1)  ;;  %v4365_v11 = vld [vmem:[%s6801_s27 + $0xc8] sm:$0xff] (!%p5144_p1) }
 0x29f   : > { %4302 = vmatprep.subr.bf16.mxu0 %v6165_v32 }
 0x2a1   : > { %3975 = vmatpush1.bf16.msra.mxu1 %v6160_v12 }
 0x2a2   : > { %4303 = vmatpush1.bf16.msra.mxu0 %v6163_v48  ;;  %3976 = vmatprep.subr.bf16.mxu1 %v6168_v49  ;;  %v5201_v48 = vpack.c.bf16 (!%p5144_p1), %v4347_v9, %v4346_v8  ;;  %v5203_v49 = vpack.c.bf16 (!%p5144_p1), %v4365_v11, %v4364_v10 }
 0x2a3   : > { %4304 = vmatprep.subr.bf16.mxu0 %v6171_v2  ;;  %v4348_v2 = vld [vmem:[%s6801_s27 + $0x40] sm:$0xff] (!%p5144_p1) }
 0x2a5   : > { %3977 = vmatpush1.bf16.msra.mxu1 %v6166_v14  ;;  %v4349_v14 = vld [vmem:[%s6801_s27 + $0x48] sm:$0xff] (!%p5144_p1) }
 0x2a6   : > { %4305 = vmatpush1.bf16.msra.mxu0 %v6169_v3  ;;  %3978 = vmatprep.subr.bf16.mxu1 %v6174_v15  ;;  %v4366_v15 = vld [vmem:[%s6801_s27 + $0xd0] sm:$0xff] (!%p5144_p1) }
 0x2a7   : > { %4306 = vmatprep.subr.bf16.mxu0 %v6177_v16  ;;  %v4367_v16 = vld [vmem:[%s6801_s27 + $0xd8] sm:$0xff] (!%p5144_p1) }
 0x2a9   : > { %3979 = vmatpush1.bf16.msra.mxu1 %v6172_v17 }
 0x2aa   : > { %4307 = vmatpush1.bf16.msra.mxu0 %v6175_v18  ;;  %3980 = vmatprep.subr.bf16.mxu1 %v6180_v19  ;;  %v5205_v18 = vpack.c.bf16 (!%p5144_p1), %v4349_v14, %v4348_v2  ;;  %v5207_v19 = vpack.c.bf16 (!%p5144_p1), %v4367_v16, %v4366_v15 }
 0x2ab   : > { %4308 = vmatprep.subr.bf16.mxu0 %v6183_v20  ;;  %v4350_v20 = vld [vmem:[%s6801_s27 + $0x50] sm:$0xff] (!%p5144_p1) }
 0x2ad   : > { %3981 = vmatpush1.bf16.msra.mxu1 %v6178_v21  ;;  %v4351_v21 = vld [vmem:[%s6801_s27 + $0x58] sm:$0xff] (!%p5144_p1) }
 0x2ae   : > { %4309 = vmatpush1.bf16.msra.mxu0 %v6181_v7  ;;  %3982 = vmatprep.subr.bf16.mxu1 %v6186_v23  ;;  %v4368_v7 = vld [vmem:[%s6801_s27 + $0xe0] sm:$0xff] (!%p5144_p1)  ;;  %v4369_v23 = vld [vmem:[%s6801_s27 + $0xe8] sm:$0xff] (!%p5144_p1) }
 0x2af   : > { %4310 = vmatprep.subr.bf16.mxu0 %v6189_v28  ;;  %v5209_v28 = vpack.c.bf16 (!%p5144_p1), %v4351_v21, %v4350_v20 }
 0x2b1   : > { %3983 = vmatpush1.bf16.msra.mxu1 %v6184_v29  ;;  %v5211_v29 = vpack.c.bf16 (!%p5144_p1), %v4369_v23, %v4368_v7 }
 0x2b2   : > { %4311 = vmatpush1.bf16.msra.mxu0 %v6187_v30  ;;  %v4352_v30 = vld [vmem:[%s6801_s27 + $0x60] sm:$0xff] (!%p5144_p1) }
 0x2b3   : > { %5188 = vmatprep.subr.bf16.mxu0 (!%p5144_p1), %v5187_v50 }
 0x2b4   : > { %3985 = vmatmul.mubr.bf16.vlgmr.msra.gmra.mrb[0].mxu1 %v972_v31  ;;  %v4353_v31 = vld [vmem:[%s6801_s27 + $0x68] sm:$0xff] (!%p5144_p1) }
 0x2b5   : > { %4313 = vmatmul.mubr.bf16.vlgmr.msra.gmra.mrb[0].mxu0 %v1070_v53  ;;  %v4370_v53 = vld [vmem:[%s6801_s27 + $0xf0] sm:$0xff] (!%p5144_p1)  ;;  %v5213_v57 = vpack.c.bf16 (!%p5144_p1), %v4353_v31, %v4352_v30 }
 0x2b6   : > { %5190 = vmatpush3.bf16.msra.mxu0 (!%p5144_p1), %v5189_v44  ;;  %v5215_v13 = vpack.c.bf16 (!%p5144_p1), %v4371_v60, %v4370_v53 }
 0x2b7   : > { %5192 = vmatprep.subr.bf16.mxu0 (!%p5144_p1), %v5191_v55 }
 0x2ba   : > { %5194 = vmatpush3.bf16.msra.mxu0 (!%p5144_p1), %v5193_v61 }
 0x2bb   : > { %5196 = vmatprep.subr.bf16.mxu0 (!%p5144_p1), %v5195_v62 }
 0x2be   : > { %5198 = vmatpush3.bf16.msra.mxu0 (!%p5144_p1), %v5197_v4 }
 0x2bf   : > { %5200 = vmatprep.subr.bf16.mxu0 (!%p5144_p1), %v5199_v5 }
 0x2c2   : > { %5202 = vmatpush3.bf16.msra.mxu0 (!%p5144_p1), %v5201_v48 }
 0x2c3   : > { %5204 = vmatprep.subr.bf16.mxu0 (!%p5144_p1), %v5203_v49 }
 0x2c6   : > { %5206 = vmatpush3.bf16.msra.mxu0 (!%p5144_p1), %v5205_v18 }
 0x2c7   : > { %5208 = vmatprep.subr.bf16.mxu0 (!%p5144_p1), %v5207_v19 }
 0x2ca   : > { %5210 = vmatpush3.bf16.msra.mxu0 (!%p5144_p1), %v5209_v28 }
 0x2cb   : > { %5212 = vmatprep.subr.bf16.mxu0 (!%p5144_p1), %v5211_v29 }
 0x2ce   : > { %5214 = vmatpush3.bf16.msra.mxu0 (!%p5144_p1), %v5213_v57 }
 0x2cf   : > { %5216 = vmatprep.subr.bf16.mxu0 (!%p5144_p1), %v5215_v13 }
 0x387   : > { %v3986_v22 = vpop.f32.mrb[0].mxu1 }
 0x388   : > { %v4314_v0 = vpop.f32.mrb[0].mxu0  ;;  %v3988_v34 = vpop.f32.mrb[1].mxu1 }
 0x389   : > { %v5219_v6 = vadd.f32 %v4314_v0, %v3986_v22  ;;  %v4316_v35 = vpop.f32.mrb[1].mxu0  ;;  %v3990_v38 = vpop.f32.mrb[2].mxu1  ;;  %v4354_v22 = vld [vmem:[%s6801_s27 + $0x70] sm:$0xff] (!%p5144_p1)  ;;  %v4355_v0 = vld [vmem:[%s6801_s27 + $0x78] sm:$0xff] (!%p5144_p1) }
 0x38a   : > { %v5220_v36 = vadd.f32 %v4316_v35, %v3988_v34  ;;  %v4318_v26 = vpop.f32.mrb[2].mxu0  ;;  %v3991_v39 = vpop.f32.mrb[3].mxu1 }
 0x38b   : > { %v4319_v40 = vpop.f32.mrb[3].mxu0 }
 0x38c   : > { %v4323_v27 = vcombine.low %v5219_v6, %v5220_v36  ;;  %4337 = sbr.rel (%p5144_p1) target bundleno = 1145 (0x479), region = 56  ;;  %v5217_v6 = vpack.c.bf16 (!%p5144_p1), %v4355_v0, %v4354_v22 }
 0x38e   : > { %v4330_v42 = vrot.slane %v4323_v27, %v4329_v37  ;;  %5218 = vmatpush3.bf16.msra.mxu0 (!%p5144_p1), %v5217_v6 }
 0x390   : > { %v4332_v43 = vadd.f32 %v4330_v42, %v356_v41 }
 0x392   : > { %4333 = vst [vmem:[#allocation2] sm:$0xf] %v4332_v43 }
 0x399   : > { %v4338_v32 = vld [vmem:[#allocation2] sm:$0xf] }
 0x39a   : > { %v4339_v12 = vmax.f32 %v4338_v32, 0.0 }
 0x39c   : > { %v4379_v3 = vrot.slane %v4339_v12, %v4329_v37 }
 0x39e   : > { %v4380_v17 = vcombine.high %v4379_v3, %v4379_v3 }
 0x3a0   : > { %4447 = vmatprep.mubr.f32.mxu0 %v4380_v17 }
 0x3a1   : > { %4448 = vmatmul.mubr.f32.vlgmr.msra.gmra.mrb[0].mxu0 %v4379_v3 }
 0x474   : > { %v5184_v34 = vpop.f32.mrb[0].mxu0 }
 0x475   : > { %v5185_v35 = vpop.f32.mrb[1].mxu0 }
 0x476   : > { %v5186_v36 = vadd.f32 %v5185_v35, %v5184_v34 }
 0x478   : > { %4454 = vst.msk [vmem:[%s321_s4] sm:$0x3] %vm4453_vm0, %v5186_v36 }
 0x479 PF: > { %s7640_s6 = sld [smem:[#allocation23_spill]]  ;;  %s4469_s23 = sshll.u32 %s321_s4, 4  ;;  %s4470_s23 = int_to_ptr.vmem [resolvable:$true] %s4469_s23 }
 0x47a   : > { %s4456_s5 = scalar_lea.sflag [#allocation5], %s280_s14  ;;  %s6280_s8 = scalar_lea.vmem %s4470_s23, 32 }
 0x47b   : > { %p6281_p0 = scmp.ne.s32.totalorder %s4470_s23, %s6280_s8  ;;  %p7641_p5 = scmp.ne.s32.totalorder %s7629_s7, 0 }
 0x47c   : > { %s6444_s1 = smov [#allocation9]  }
 0x47d   : > { %p6282_p3 = pnand %p6281_p0, %p7641_p5  ;;  %s6284_s12 = sshll.u32 %s6444_s1, 4  ;;  %s6285_s12 = int_to_ptr.vmem [resolvable:$false] %s6284_s12 }
 0x47e   : > { %s6286_s3 = scalar_lea.vmem %s6285_s12, 64  ;;  %p6287_p12 = scmp.lt.s32.totalorder %s4470_s23, %s6285_s12 }
 0x47f   : > { %s7510_s9 = scalar_lea.hbm %s7640_s6, %s6794_s10  ;;  %p6283_p7 = pneg %p6282_p3 }
 0x480   : > { %p6288_p8 = scmp.lt.s32.totalorder %s6286_s3, %s6280_s8 }
 0x482   : > { %p6289_p13 = por %p6288_p8, %p6287_p12 }
 0x484   : > { %p6290_p10 = pnand %p6289_p13, %p6283_p7 }
 0x486   : > { %6293 = shalt.err (!%p6290_p10)
}
 0x487   : > { %s6294_s14 = scalar_lea.hbm %s7510_s9, 32  ;;  %s6298_s18 = scalar_lea.hbm %s7640_s6, 64 }
 0x488   : > { %p6295_p4 = scmp.ne.s32.totalorder %s7510_s9, %s6294_s14  ;;  %p6299_p11 = scmp.lt.u32.totalorder %s7510_s9, %s7640_s6 }
 0x489   : > { %p6300_p9 = scmp.lt.u32.totalorder %s6298_s18, %s6294_s14  ;;  %p6302_p0 = scmp.lt.u32.totalorder %s6294_s14, %s7510_s9 }
 0x48a   : > { %p6296_p2 = pnand %p6295_p4, %p7641_p5 }
 0x48b   : > { %p6301_p1 = por %p6300_p9, %p6299_p11 }
 0x48c   : > { %p6297_p6 = pneg %p6296_p2 }
 0x48d   : > { %p6303_p3 = por %p6302_p0, %p6301_p1 }
 0x48f   : > { %p6304_p7 = pnand %p6303_p3, %p6297_p6 }
 0x491   : > { %6307 = shalt.err (!%p6304_p7)
}
 0x492   : > { %5283 = dma.vmem_to_hbm [thread:$0]  (%p7641_p5), %s4470_s23, 32, %s7510_s9, %s4456_s5  }
 0x493 PF: > { %p5300_p12 = scmp.ge.s32.totalorder %s6434_s28, 2  ;;  %s4481_s0 = sand.u32 1, %s6382_s15  }
 0x494   : > { %p7642_p8 = scmp.ne.s32.totalorder %s7630_s11, 0  ;;  %s4482_s25 = scalar_lea.sflag [#allocation5], %s4481_s0 }
 0x496   : > { %p5296_p13 = pnand %p5300_p12, %p7642_p8 }
 0x498   : > { %6377 = dma.done.wait (!%p5296_p13), %s4482_s25, 32  }
 0x499   : > { %6379 = vsyncadd (!%p5296_p13), %s4482_s25, 4294967264  ;;  %s23_s28 = sadd.s32 1, %s6434_s28   ;;  %s7644_s7 = sld [smem:[#allocation14_spill]] }
 0x49a   : > { %p7538_p10 = scmp.ge.s32.totalorder %s23_s28, 6   ;;  %s7645_s23 = sld [smem:[#allocation19_spill]] }
 0x49b   : > { %s7646_s25 = sld [smem:[#allocation16_spill]]  ;;  %s7647_s11 = sld [smem:[#allocation17_spill]] }
 0x49c   : > { %s7648_s27 = sld [smem:[#allocation18_spill]]  ;;  %s7650_s15 = smov %s6386_s16 }
 0x49d   : > { %s7651_s16 = smov %s6390_s17  ;;  %s7652_s17 = smov %s6704_s30 }
 0x49e   : > { %s7653_s18 = smov %s6398_s19  ;;  %s7654_s19 = smov %s6402_s20 }
 0x49f   : > { %s7655_s20 = smov %s6656_s13  ;;  %s7656_s21 = smov %s6410_s22 }
 0x4a0   : > { %s7657_s22 = smov %s7644_s7  ;;  %s7658_s24 = smov %s6426_s26 }
 0x4a1   : > { %s7659_s26 = smov %s7647_s11  ;;  %22 = sbr.rel (!%p7538_p10) target bundleno = 17 (0x11), region = 116 }
 0x4a8   :  { %4487 = vsyncpa [#allocation4], 1 }
 0x4a9   :  { %4489 = vsyncpa [#allocation4 + $0x1], 1 }
 0x4aa   :  { %4490 = vsyncpa [#allocation7], 1 }
 0x4ab   :  { %4492 = vsyncpa [#allocation7 + $0x1], 1 }
 0x4ac   :  { %4493 = vsyncpa [#allocation5], 1 }
 0x4ad   :  { %4495 = vsyncpa [#allocation5 + $0x1], 1 }

</bundles_post_ra>
